<compile_context>
chip_gen: v6e
topology: v6e:2x2x1
jax: 0.10.0
libtpu: 0.0.40
codegen_flags: <defaults>
</compile_context>

<pallas_src>
import math

import jax
import jax.numpy as jnp
from jax.experimental import pallas as pl
from jax.experimental.pallas import tpu as pltpu

NUM_LAYERS = 2
NUM_HEADS = 4
LN_EPS = 1e-5

# w_slab per-layer matrix order (all pre-transposed to `x @ W` layout)
WQ, WK, WV, W1, W2, WO = range(6)
# b_slab per-layer row order
BQ, BK, BV, BO, B1, B2, LN1W, LN1B, LN2W, LN2B = range(10)


def _layer_norm(x, w, b):
    mu = jnp.mean(x, axis=-1, keepdims=True)
    xc = x - mu
    var = jnp.mean(xc * xc, axis=-1, keepdims=True)
    return xc * jax.lax.rsqrt(var + LN_EPS) * w + b


def _gelu_exact(x):
    # PyTorch F.gelu default (erf form) == activation='gelu'
    return 0.5 * x * (1.0 + jax.lax.erf(x * (1.0 / math.sqrt(2.0))))


def encoder_kernel(x_ref, mask_ref, w_ref, b_ref, lnf_ref, out_ref):
    B, S, D = x_ref.shape
    H = NUM_HEADS
    hd = D // H

    # (B, S, D) -> (B*S, D): sublane-aligned leading-dim merge (layout-free),
    # so the QKV / FFN projections run as single full-slab MXU matmuls.
    # NOTE: at production sizes, cast x / weights to bf16 here (keeping
    # preferred_element_type=f32 accumulation) for MXU throughput; kept f32 to
    # match PyTorch numerics at this tiny size.
    x = x_ref[...].astype(jnp.float32).reshape(B * S, D)
    mask = mask_ref[...].astype(jnp.float32)[None, :, :]   # (1, S, S), hoisted

    def to_heads(t):
        # (B*S, D) -> (H, B*S, hd) -> (H*B, S, hd).  The final reshape only
        # splits the sublane dim at a multiple of 8 and merges leading dims.
        t = jnp.stack([t[:, h * hd:(h + 1) * hd] for h in range(H)], axis=0)
        return t.reshape(H * B, S, hd)

    for l in range(NUM_LAYERS):
        bl = b_ref[l]                                        # (10, D), hoisted
        bq, bk, bv, bo = bl[BQ:BQ + 1], bl[BK:BK + 1], bl[BV:BV + 1], bl[BO:BO + 1]
        b1, b2 = bl[B1:B1 + 1], bl[B2:B2 + 1]
        ln1w, ln1b = bl[LN1W:LN1W + 1], bl[LN1B:LN1B + 1]
        ln2w, ln2b = bl[LN2W:LN2W + 1], bl[LN2B:LN2B + 1]

        # ---- self-attention (softmax scale pre-folded into WQ / bq) ----
        q = jnp.dot(x, w_ref[l, WQ], preferred_element_type=jnp.float32) + bq
        k = jnp.dot(x, w_ref[l, WK], preferred_element_type=jnp.float32) + bk
        v = jnp.dot(x, w_ref[l, WV], preferred_element_type=jnp.float32) + bv

        qh, kh, vh = to_heads(q), to_heads(k), to_heads(v)   # (H*B, S, hd)
        s = jnp.einsum('nqd,nkd->nqk', qh, kh,
                       preferred_element_type=jnp.float32) + mask
        m = jnp.max(s, axis=-1, keepdims=True)
        e = jnp.exp(s - m)
        p = e * pl.reciprocal(jnp.sum(e, axis=-1, keepdims=True), approx=True)
        o = jnp.einsum('nqk,nkd->nqd', p, vh,
                       preferred_element_type=jnp.float32)   # (H*B, S, hd)

        # concat(heads) @ Wo^T  ==  sum_h  o_h @ Wo^T[h*hd:(h+1)*hd, :]
        o = o.reshape(H, B * S, hd)
        woT_h = w_ref[l, WO].reshape(H, hd, D)               # sublane split (free)
        attn = jnp.einsum('hnd,hdo->hno', o, woT_h,
                          preferred_element_type=jnp.float32)
        attn = jnp.sum(attn, axis=0) + bo                    # (B*S, D)

        # TODO(synk): dropout (p=0.1) skipped — inference / eval-mode identity
        x = _layer_norm(x + attn, ln1w, ln1b)

        # ---- feed-forward ----
        h1 = _gelu_exact(jnp.dot(x, w_ref[l, W1],
                                 preferred_element_type=jnp.float32) + b1)
        h2 = jnp.dot(h1, w_ref[l, W2], preferred_element_type=jnp.float32) + b2
        x = _layer_norm(x + h2, ln2w, ln2b)

    # final encoder norm (nn.TransformerEncoder(norm=encoder_norm))
    x = _layer_norm(x, lnf_ref[0:1], lnf_ref[1:2])
    out_ref[...] = x.reshape(B, S, D).astype(out_ref.dtype)


def xavier_uniform(key, shape):
    # PyTorch init.xavier_uniform_ on a (fan_out, fan_in) matrix
    fan_out, fan_in = shape[-2], shape[-1]
    bound = math.sqrt(6.0 / (fan_in + fan_out))
    return jax.random.uniform(key, shape, jnp.float32, -bound, bound)


def init_params(key, d_model):
    """Parameters in native PyTorch layout (out_features, in_features)."""
    L, D = NUM_LAYERS, d_model
    ks = jax.random.split(key, 6)
    return {
        # MultiheadAttention: in_proj (3D, D), out_proj (D, D); biases zero
        "wqkv": xavier_uniform(ks[0], (L, 3 * D, D)),
        "bqkv": jnp.zeros((L, 3 * D), jnp.float32),
        "wo":   xavier_uniform(ks[1], (L, D, D)),
        "bo":   jnp.zeros((L, D), jnp.float32),
        # feed-forward: linear1 (D_ff=D, D), linear2 (D, D_ff=D)
        "w1":   xavier_uniform(ks[2], (L, D, D)),
        "b1":   0.01 * jax.random.normal(ks[3], (L, D), jnp.float32),
        "w2":   xavier_uniform(ks[4], (L, D, D)),
        "b2":   0.01 * jax.random.normal(ks[5], (L, D), jnp.float32),
        # per-layer LayerNorms + final encoder LayerNorm (defaults)
        "ln1w": jnp.ones((L, D), jnp.float32), "ln1b": jnp.zeros((L, D), jnp.float32),
        "ln2w": jnp.ones((L, D), jnp.float32), "ln2b": jnp.zeros((L, D), jnp.float32),
        "lnfw": jnp.ones((D,), jnp.float32),   "lnfb": jnp.zeros((D,), jnp.float32),
    }


def pack_params(p):
    """Pre-transpose to x @ W layout, fold the 1/sqrt(head_dim) softmax scale
    into the Q projection, and pack everything into 3 slabs (done once in the
    wrapper, zero in-kernel cost)."""
    D = p["wo"].shape[-1]
    hd = D // NUM_HEADS
    scale = 1.0 / math.sqrt(hd)
    t = lambda w: jnp.swapaxes(w, 1, 2)
    wq = t(p["wqkv"][:, 0:D, :]) * scale
    wk = t(p["wqkv"][:, D:2 * D, :])
    wv = t(p["wqkv"][:, 2 * D:3 * D, :])
    w_slab = jnp.stack([wq, wk, wv, t(p["w1"]), t(p["w2"]), t(p["wo"])],
                       axis=1)                                  # (L, 6, D, D)
    b_slab = jnp.stack([p["bqkv"][:, 0:D] * scale,
                        p["bqkv"][:, D:2 * D],
                        p["bqkv"][:, 2 * D:3 * D],
                        p["bo"], p["b1"], p["b2"],
                        p["ln1w"], p["ln1b"], p["ln2w"], p["ln2b"]],
                       axis=1)                                  # (L, 10, D)
    lnf = jnp.stack([p["lnfw"], p["lnfb"]], axis=0)             # (2, D)
    return w_slab, b_slab, lnf


def trans_encoder(x, src_mask, params):
    """x: (B, S, D) f32; src_mask: (S, S) additive f32; params: PyTorch-layout dict."""
    B, S, D = x.shape
    assert D % NUM_HEADS == 0
    w_slab, b_slab, lnf = pack_params(params)

    # Everything (activations + weights + per-head S x S scores) stays resident
    # in VMEM for the single grid step; guard the assumption so scaling D / S
    # (especially on v7x: 64 MiB physical VMEM) forces a re-derived tiling.
    resident_bytes = 4 * (2 * x.size + src_mask.size + w_slab.size +
                          b_slab.size + lnf.size + NUM_HEADS * B * S * S)
    assert resident_bytes < 8 * 1024 * 1024, (
        "TransEncoder kernel assumes the whole problem fits in VMEM; "
        "re-tile over S (attention) / D (FFN) before scaling up.")

    # TODO(synk): on v7x (2 TensorCores) a batch/sequence grid axis with
    # dimension_semantics=("parallel",) would engage the second core; at
    # B=2, S=8, D=32 a single grid step is faster on v5e/v6e (one round of
    # per-step pipeline overhead + weight DMAs instead of B).
    grid_spec = pltpu.PrefetchScalarGridSpec(
        num_scalar_prefetch=0,
        grid=(1,),
        in_specs=[
            pl.BlockSpec((B, S, D), lambda i: (0, 0, 0)),
            pl.BlockSpec((S, S), lambda i: (0, 0)),
            pl.BlockSpec(w_slab.shape, lambda i: (0, 0, 0, 0)),
            pl.BlockSpec(b_slab.shape, lambda i: (0, 0, 0)),
            pl.BlockSpec(lnf.shape, lambda i: (0, 0)),
        ],
        # Output store is only 2 KB here; the (B, S*D) lane-dense relayout was
        # measured-irrelevant at this size and skipped to keep layouts trivial.
        out_specs=pl.BlockSpec((B, S, D), lambda i: (0, 0, 0)),
    )
    return pl.pallas_call(
        encoder_kernel,
        out_shape=jax.ShapeDtypeStruct((B, S, D), x.dtype),
        grid_spec=grid_spec,
        compiler_params=pltpu.CompilerParams(
            dimension_semantics=("arbitrary",),
            vmem_limit_bytes=32 * 1024 * 1024,
        ),
    )(x, src_mask, w_slab, b_slab, lnf)


if __name__ == "__main__":
    B, S, D = 2, 8, 32  # config.Embedding.base_dim = 32; nhead=4 -> head_dim=8
    key = jax.random.PRNGKey(0)
    kx, kp = jax.random.split(key)

    x = jax.random.normal(kx, (B, S, D), jnp.float32)
    # causal additive src_mask (0 = attend, -1e9 = masked)
    src_mask = jnp.where(jnp.tril(jnp.ones((S, S), dtype=bool)),
                         0.0, -1e9).astype(jnp.float32)
    params = init_params(kp, D)

    out = jax.block_until_ready(trans_encoder(x, src_mask, params))

    assert out.shape == (B, S, D), out.shape
    assert bool(jnp.all(jnp.isfinite(out)))
    print("KERNEL_OK")
</pallas_src>

<mosaic_0001>
module attributes {stable_mosaic.version = 11 : i64} {
  func.func @encoder_kernel(%arg0: i32, %arg1: memref<2x8x32xf32, #tpu.memory_space<vmem>>, %arg2: memref<8x8xf32, #tpu.memory_space<vmem>>, %arg3: memref<2x6x32x32xf32, #tpu.memory_space<vmem>>, %arg4: memref<2x10x32xf32, #tpu.memory_space<vmem>>, %arg5: memref<2x32xf32, #tpu.memory_space<vmem>>, %arg6: memref<2x8x32xf32, #tpu.memory_space<vmem>>) attributes {dimension_semantics = [#tpu.dimension_semantics<arbitrary>], iteration_bounds = array<i64: 1>, scalar_prefetch = 0 : i64, scratch_operands = 0 : i64, tpu.core_type = #tpu.core_type<tc>, window_params = [{pipeline_mode = #tpu.pipeline_mode<synchronous>, transform_indices = @transform_0, window_bounds = array<i64: 2, 8, 32>}, {pipeline_mode = #tpu.pipeline_mode<synchronous>, transform_indices = @transform_1, window_bounds = array<i64: 8, 8>}, {pipeline_mode = #tpu.pipeline_mode<synchronous>, transform_indices = @transform_2, window_bounds = array<i64: 2, 6, 32, 32>}, {pipeline_mode = #tpu.pipeline_mode<synchronous>, transform_indices = @transform_3, window_bounds = array<i64: 2, 10, 32>}, {pipeline_mode = #tpu.pipeline_mode<synchronous>, transform_indices = @transform_4, window_bounds = array<i64: 2, 32>}, {pipeline_mode = #tpu.pipeline_mode<synchronous>, transform_indices = @transform_5, window_bounds = array<i64: 2, 8, 32>}]} {
    %c0 = arith.constant 0 : index
    %c0_0 = arith.constant 0 : index
    %c0_1 = arith.constant 0 : index
    %0 = vector.load %arg1[%c0, %c0_0, %c0_1] : memref<2x8x32xf32, #tpu.memory_space<vmem>>, vector<2x8x32xf32>
    %1 = vector.shape_cast %0 : vector<2x8x32xf32> to vector<16x32xf32>
    %c0_2 = arith.constant 0 : index
    %c0_3 = arith.constant 0 : index
    %2 = vector.load %arg2[%c0_2, %c0_3] : memref<8x8xf32, #tpu.memory_space<vmem>>, vector<8x8xf32>
    %3 = vector.shape_cast %2 : vector<8x8xf32> to vector<1x8x8xf32>
    %c0_4 = arith.constant 0 : index
    %c0_5 = arith.constant 0 : index
    %c0_6 = arith.constant 0 : index
    %4 = vector.load %arg4[%c0_4, %c0_5, %c0_6] : memref<2x10x32xf32, #tpu.memory_space<vmem>>, vector<1x10x32xf32>
    %5 = vector.shape_cast %4 : vector<1x10x32xf32> to vector<10x32xf32>
    %6 = vector.extract_strided_slice %5 {offsets = [0, 0], sizes = [1, 32], strides = [1, 1]} : vector<10x32xf32> to vector<1x32xf32>
    %7 = vector.extract_strided_slice %5 {offsets = [1, 0], sizes = [1, 32], strides = [1, 1]} : vector<10x32xf32> to vector<1x32xf32>
    %8 = vector.extract_strided_slice %5 {offsets = [2, 0], sizes = [1, 32], strides = [1, 1]} : vector<10x32xf32> to vector<1x32xf32>
    %9 = vector.extract_strided_slice %5 {offsets = [3, 0], sizes = [1, 32], strides = [1, 1]} : vector<10x32xf32> to vector<1x32xf32>
    %10 = vector.extract_strided_slice %5 {offsets = [4, 0], sizes = [1, 32], strides = [1, 1]} : vector<10x32xf32> to vector<1x32xf32>
    %11 = vector.extract_strided_slice %5 {offsets = [5, 0], sizes = [1, 32], strides = [1, 1]} : vector<10x32xf32> to vector<1x32xf32>
    %12 = vector.extract_strided_slice %5 {offsets = [6, 0], sizes = [1, 32], strides = [1, 1]} : vector<10x32xf32> to vector<1x32xf32>
    %13 = vector.extract_strided_slice %5 {offsets = [7, 0], sizes = [1, 32], strides = [1, 1]} : vector<10x32xf32> to vector<1x32xf32>
    %14 = vector.extract_strided_slice %5 {offsets = [8, 0], sizes = [1, 32], strides = [1, 1]} : vector<10x32xf32> to vector<1x32xf32>
    %15 = vector.extract_strided_slice %5 {offsets = [9, 0], sizes = [1, 32], strides = [1, 1]} : vector<10x32xf32> to vector<1x32xf32>
    %c0_7 = arith.constant 0 : index
    %c0_8 = arith.constant 0 : index
    %c0_9 = arith.constant 0 : index
    %c0_10 = arith.constant 0 : index
    %16 = vector.load %arg3[%c0_7, %c0_8, %c0_9, %c0_10] : memref<2x6x32x32xf32, #tpu.memory_space<vmem>>, vector<1x1x32x32xf32>
    %17 = vector.shape_cast %16 : vector<1x1x32x32xf32> to vector<32x32xf32>
    %cst = arith.constant dense<0.000000e+00> : vector<16x32xf32>
    %18 = tpu.matmul %1, %17, %cst {dimension_numbers = #tpu.dot_dimension_numbers<[1], [0], [0], [1], [0, 0, 1, 1], [], []>} : vector<16x32xf32>, vector<32x32xf32>, vector<16x32xf32> -> vector<16x32xf32>
    %19 = vector.broadcast %6 : vector<1x32xf32> to vector<16x32xf32>
    %20 = arith.addf %18, %19 : vector<16x32xf32>
    %c0_11 = arith.constant 0 : index
    %c1 = arith.constant 1 : index
    %c0_12 = arith.constant 0 : index
    %c0_13 = arith.constant 0 : index
    %21 = vector.load %arg3[%c0_11, %c1, %c0_12, %c0_13] : memref<2x6x32x32xf32, #tpu.memory_space<vmem>>, vector<1x1x32x32xf32>
    %22 = vector.shape_cast %21 : vector<1x1x32x32xf32> to vector<32x32xf32>
    %cst_14 = arith.constant dense<0.000000e+00> : vector<16x32xf32>
    %23 = tpu.matmul %1, %22, %cst_14 {dimension_numbers = #tpu.dot_dimension_numbers<[1], [0], [0], [1], [0, 0, 1, 1], [], []>} : vector<16x32xf32>, vector<32x32xf32>, vector<16x32xf32> -> vector<16x32xf32>
    %24 = vector.broadcast %7 : vector<1x32xf32> to vector<16x32xf32>
    %25 = arith.addf %23, %24 : vector<16x32xf32>
    %c0_15 = arith.constant 0 : index
    %c2 = arith.constant 2 : index
    %c0_16 = arith.constant 0 : index
    %c0_17 = arith.constant 0 : index
    %26 = vector.load %arg3[%c0_15, %c2, %c0_16, %c0_17] : memref<2x6x32x32xf32, #tpu.memory_space<vmem>>, vector<1x1x32x32xf32>
    %27 = vector.shape_cast %26 : vector<1x1x32x32xf32> to vector<32x32xf32>
    %cst_18 = arith.constant dense<0.000000e+00> : vector<16x32xf32>
    %28 = tpu.matmul %1, %27, %cst_18 {dimension_numbers = #tpu.dot_dimension_numbers<[1], [0], [0], [1], [0, 0, 1, 1], [], []>} : vector<16x32xf32>, vector<32x32xf32>, vector<16x32xf32> -> vector<16x32xf32>
    %29 = vector.broadcast %8 : vector<1x32xf32> to vector<16x32xf32>
    %30 = arith.addf %28, %29 : vector<16x32xf32>
    %31 = vector.extract_strided_slice %20 {offsets = [0, 0], sizes = [16, 8], strides = [1, 1]} : vector<16x32xf32> to vector<16x8xf32>
    %32 = vector.extract_strided_slice %20 {offsets = [0, 8], sizes = [16, 8], strides = [1, 1]} : vector<16x32xf32> to vector<16x8xf32>
    %33 = vector.extract_strided_slice %20 {offsets = [0, 16], sizes = [16, 8], strides = [1, 1]} : vector<16x32xf32> to vector<16x8xf32>
    %34 = vector.extract_strided_slice %20 {offsets = [0, 24], sizes = [16, 8], strides = [1, 1]} : vector<16x32xf32> to vector<16x8xf32>
    %35 = vector.shape_cast %31 : vector<16x8xf32> to vector<1x16x8xf32>
    %36 = vector.shape_cast %32 : vector<16x8xf32> to vector<1x16x8xf32>
    %37 = vector.shape_cast %33 : vector<16x8xf32> to vector<1x16x8xf32>
    %38 = vector.shape_cast %34 : vector<16x8xf32> to vector<1x16x8xf32>
    %39 = tpu.concatenate %35, %36, %37, %38 in 0 : vector<1x16x8xf32>, vector<1x16x8xf32>, vector<1x16x8xf32>, vector<1x16x8xf32> -> vector<4x16x8xf32>
    %40 = vector.shape_cast %39 : vector<4x16x8xf32> to vector<8x8x8xf32>
    %41 = vector.extract_strided_slice %25 {offsets = [0, 0], sizes = [16, 8], strides = [1, 1]} : vector<16x32xf32> to vector<16x8xf32>
    %42 = vector.extract_strided_slice %25 {offsets = [0, 8], sizes = [16, 8], strides = [1, 1]} : vector<16x32xf32> to vector<16x8xf32>
    %43 = vector.extract_strided_slice %25 {offsets = [0, 16], sizes = [16, 8], strides = [1, 1]} : vector<16x32xf32> to vector<16x8xf32>
    %44 = vector.extract_strided_slice %25 {offsets = [0, 24], sizes = [16, 8], strides = [1, 1]} : vector<16x32xf32> to vector<16x8xf32>
    %45 = vector.shape_cast %41 : vector<16x8xf32> to vector<1x16x8xf32>
    %46 = vector.shape_cast %42 : vector<16x8xf32> to vector<1x16x8xf32>
    %47 = vector.shape_cast %43 : vector<16x8xf32> to vector<1x16x8xf32>
    %48 = vector.shape_cast %44 : vector<16x8xf32> to vector<1x16x8xf32>
    %49 = tpu.concatenate %45, %46, %47, %48 in 0 : vector<1x16x8xf32>, vector<1x16x8xf32>, vector<1x16x8xf32>, vector<1x16x8xf32> -> vector<4x16x8xf32>
    %50 = vector.shape_cast %49 : vector<4x16x8xf32> to vector<8x8x8xf32>
    %51 = vector.extract_strided_slice %30 {offsets = [0, 0], sizes = [16, 8], strides = [1, 1]} : vector<16x32xf32> to vector<16x8xf32>
    %52 = vector.extract_strided_slice %30 {offsets = [0, 8], sizes = [16, 8], strides = [1, 1]} : vector<16x32xf32> to vector<16x8xf32>
    %53 = vector.extract_strided_slice %30 {offsets = [0, 16], sizes = [16, 8], strides = [1, 1]} : vector<16x32xf32> to vector<16x8xf32>
    %54 = vector.extract_strided_slice %30 {offsets = [0, 24], sizes = [16, 8], strides = [1, 1]} : vector<16x32xf32> to vector<16x8xf32>
    %55 = vector.shape_cast %51 : vector<16x8xf32> to vector<1x16x8xf32>
    %56 = vector.shape_cast %52 : vector<16x8xf32> to vector<1x16x8xf32>
    %57 = vector.shape_cast %53 : vector<16x8xf32> to vector<1x16x8xf32>
    %58 = vector.shape_cast %54 : vector<16x8xf32> to vector<1x16x8xf32>
    %59 = tpu.concatenate %55, %56, %57, %58 in 0 : vector<1x16x8xf32>, vector<1x16x8xf32>, vector<1x16x8xf32>, vector<1x16x8xf32> -> vector<4x16x8xf32>
    %60 = vector.shape_cast %59 : vector<4x16x8xf32> to vector<8x8x8xf32>
    "tpu.trace_start"() <{level = 10 : i32, message = "nqd,nkd->nqk"}> : () -> ()
    %cst_19 = arith.constant dense<0.000000e+00> : vector<8x8x8xf32>
    %61 = tpu.matmul %40, %50, %cst_19 {dimension_numbers = #tpu.dot_dimension_numbers<[2], [2], [1], [1], [0, 0, 0, 1, 1, 1], [0], [0]>} : vector<8x8x8xf32>, vector<8x8x8xf32>, vector<8x8x8xf32> -> vector<8x8x8xf32>
    "tpu.trace_stop"() : () -> ()
    %62 = vector.broadcast %3 : vector<1x8x8xf32> to vector<8x8x8xf32>
    %63 = arith.addf %61, %62 : vector<8x8x8xf32>
    %cst_20 = arith.constant dense<0xFF800000> : vector<8x8xf32>
    %64 = vector.multi_reduction <maximumf>, %63, %cst_20 [2] : vector<8x8x8xf32> to vector<8x8xf32>
    %65 = vector.shape_cast %64 : vector<8x8xf32> to vector<8x8x1xf32>
    %66 = vector.broadcast %65 : vector<8x8x1xf32> to vector<8x8x8xf32>
    %67 = arith.subf %63, %66 : vector<8x8x8xf32>
    %68 = math.exp %67 : vector<8x8x8xf32>
    %cst_21 = arith.constant dense<0.000000e+00> : vector<8x8xf32>
    %69 = vector.multi_reduction <add>, %68, %cst_21 [2] : vector<8x8x8xf32> to vector<8x8xf32>
    %70 = vector.shape_cast %69 : vector<8x8xf32> to vector<8x8x1xf32>
    %71 = tpu.reciprocal %70 {approx = true} : vector<8x8x1xf32> -> vector<8x8x1xf32>
    %72 = vector.broadcast %71 : vector<8x8x1xf32> to vector<8x8x8xf32>
    %73 = arith.mulf %68, %72 : vector<8x8x8xf32>
    "tpu.trace_start"() <{level = 10 : i32, message = "nqk,nkd->nqd"}> : () -> ()
    %cst_22 = arith.constant dense<0.000000e+00> : vector<8x8x8xf32>
    %74 = tpu.matmul %73, %60, %cst_22 {dimension_numbers = #tpu.dot_dimension_numbers<[2], [1], [1], [2], [0, 0, 0, 1, 1, 2], [0], [0]>} : vector<8x8x8xf32>, vector<8x8x8xf32>, vector<8x8x8xf32> -> vector<8x8x8xf32>
    "tpu.trace_stop"() : () -> ()
    %75 = vector.shape_cast %74 : vector<8x8x8xf32> to vector<4x16x8xf32>
    %c0_23 = arith.constant 0 : index
    %c5 = arith.constant 5 : index
    %c0_24 = arith.constant 0 : index
    %c0_25 = arith.constant 0 : index
    %76 = vector.load %arg3[%c0_23, %c5, %c0_24, %c0_25] : memref<2x6x32x32xf32, #tpu.memory_space<vmem>>, vector<1x1x32x32xf32>
    %77 = vector.shape_cast %76 : vector<1x1x32x32xf32> to vector<32x32xf32>
    %78 = vector.shape_cast %77 : vector<32x32xf32> to vector<4x8x32xf32>
    "tpu.trace_start"() <{level = 10 : i32, message = "hnd,hdo->hno"}> : () -> ()
    %cst_26 = arith.constant dense<0.000000e+00> : vector<4x16x32xf32>
    %79 = tpu.matmul %75, %78, %cst_26 {dimension_numbers = #tpu.dot_dimension_numbers<[2], [1], [1], [2], [0, 0, 0, 1, 1, 2], [0], [0]>} : vector<4x16x8xf32>, vector<4x8x32xf32>, vector<4x16x32xf32> -> vector<4x16x32xf32>
    "tpu.trace_stop"() : () -> ()
    %cst_27 = arith.constant dense<0.000000e+00> : vector<16x32xf32>
    %80 = vector.multi_reduction <add>, %79, %cst_27 [0] : vector<4x16x32xf32> to vector<16x32xf32>
    %81 = vector.broadcast %9 : vector<1x32xf32> to vector<16x32xf32>
    %82 = arith.addf %80, %81 : vector<16x32xf32>
    %83 = arith.addf %1, %82 : vector<16x32xf32>
    %cst_28 = arith.constant dense<0.000000e+00> : vector<16xf32>
    %84 = vector.multi_reduction <add>, %83, %cst_28 [1] : vector<16x32xf32> to vector<16xf32>
    %85 = vector.shape_cast %84 : vector<16xf32> to vector<16x1xf32>
    %cst_29 = arith.constant 3.200000e+01 : f32
    %86 = vector.broadcast %cst_29 : f32 to vector<16x1xf32>
    %87 = arith.divf %85, %86 : vector<16x1xf32>
    %88 = vector.broadcast %87 : vector<16x1xf32> to vector<16x32xf32>
    %89 = arith.subf %83, %88 : vector<16x32xf32>
    %90 = arith.mulf %89, %89 : vector<16x32xf32>
    %cst_30 = arith.constant dense<0.000000e+00> : vector<16xf32>
    %91 = vector.multi_reduction <add>, %90, %cst_30 [1] : vector<16x32xf32> to vector<16xf32>
    %92 = vector.shape_cast %91 : vector<16xf32> to vector<16x1xf32>
    %cst_31 = arith.constant 3.200000e+01 : f32
    %93 = vector.broadcast %cst_31 : f32 to vector<16x1xf32>
    %94 = arith.divf %92, %93 : vector<16x1xf32>
    %cst_32 = arith.constant 9.99999974E-6 : f32
    %95 = vector.broadcast %cst_32 : f32 to vector<16x1xf32>
    %96 = arith.addf %94, %95 : vector<16x1xf32>
    %97 = math.rsqrt %96 : vector<16x1xf32>
    %98 = vector.broadcast %97 : vector<16x1xf32> to vector<16x32xf32>
    %99 = arith.mulf %89, %98 : vector<16x32xf32>
    %100 = vector.broadcast %12 : vector<1x32xf32> to vector<16x32xf32>
    %101 = arith.mulf %99, %100 : vector<16x32xf32>
    %102 = vector.broadcast %13 : vector<1x32xf32> to vector<16x32xf32>
    %103 = arith.addf %101, %102 : vector<16x32xf32>
    %c0_33 = arith.constant 0 : index
    %c3 = arith.constant 3 : index
    %c0_34 = arith.constant 0 : index
    %c0_35 = arith.constant 0 : index
    %104 = vector.load %arg3[%c0_33, %c3, %c0_34, %c0_35] : memref<2x6x32x32xf32, #tpu.memory_space<vmem>>, vector<1x1x32x32xf32>
    %105 = vector.shape_cast %104 : vector<1x1x32x32xf32> to vector<32x32xf32>
    %cst_36 = arith.constant dense<0.000000e+00> : vector<16x32xf32>
    %106 = tpu.matmul %103, %105, %cst_36 {dimension_numbers = #tpu.dot_dimension_numbers<[1], [0], [0], [1], [0, 0, 1, 1], [], []>} : vector<16x32xf32>, vector<32x32xf32>, vector<16x32xf32> -> vector<16x32xf32>
    %107 = vector.broadcast %10 : vector<1x32xf32> to vector<16x32xf32>
    %108 = arith.addf %106, %107 : vector<16x32xf32>
    %cst_37 = arith.constant 5.000000e-01 : f32
    %109 = vector.broadcast %cst_37 : f32 to vector<16x32xf32>
    %110 = arith.mulf %109, %108 : vector<16x32xf32>
    %cst_38 = arith.constant 0.707106769 : f32
    %111 = vector.broadcast %cst_38 : f32 to vector<16x32xf32>
    %112 = arith.mulf %108, %111 : vector<16x32xf32>
    %113 = math.erf %112 : vector<16x32xf32>
    %cst_39 = arith.constant 1.000000e+00 : f32
    %114 = vector.broadcast %cst_39 : f32 to vector<16x32xf32>
    %115 = arith.addf %114, %113 : vector<16x32xf32>
    %116 = arith.mulf %110, %115 : vector<16x32xf32>
    %c0_40 = arith.constant 0 : index
    %c4 = arith.constant 4 : index
    %c0_41 = arith.constant 0 : index
    %c0_42 = arith.constant 0 : index
    %117 = vector.load %arg3[%c0_40, %c4, %c0_41, %c0_42] : memref<2x6x32x32xf32, #tpu.memory_space<vmem>>, vector<1x1x32x32xf32>
    %118 = vector.shape_cast %117 : vector<1x1x32x32xf32> to vector<32x32xf32>
    %cst_43 = arith.constant dense<0.000000e+00> : vector<16x32xf32>
    %119 = tpu.matmul %116, %118, %cst_43 {dimension_numbers = #tpu.dot_dimension_numbers<[1], [0], [0], [1], [0, 0, 1, 1], [], []>} : vector<16x32xf32>, vector<32x32xf32>, vector<16x32xf32> -> vector<16x32xf32>
    %120 = vector.broadcast %11 : vector<1x32xf32> to vector<16x32xf32>
    %121 = arith.addf %119, %120 : vector<16x32xf32>
    %122 = arith.addf %103, %121 : vector<16x32xf32>
    %cst_44 = arith.constant dense<0.000000e+00> : vector<16xf32>
    %123 = vector.multi_reduction <add>, %122, %cst_44 [1] : vector<16x32xf32> to vector<16xf32>
    %124 = vector.shape_cast %123 : vector<16xf32> to vector<16x1xf32>
    %cst_45 = arith.constant 3.200000e+01 : f32
    %125 = vector.broadcast %cst_45 : f32 to vector<16x1xf32>
    %126 = arith.divf %124, %125 : vector<16x1xf32>
    %127 = vector.broadcast %126 : vector<16x1xf32> to vector<16x32xf32>
    %128 = arith.subf %122, %127 : vector<16x32xf32>
    %129 = arith.mulf %128, %128 : vector<16x32xf32>
    %cst_46 = arith.constant dense<0.000000e+00> : vector<16xf32>
    %130 = vector.multi_reduction <add>, %129, %cst_46 [1] : vector<16x32xf32> to vector<16xf32>
    %131 = vector.shape_cast %130 : vector<16xf32> to vector<16x1xf32>
    %cst_47 = arith.constant 3.200000e+01 : f32
    %132 = vector.broadcast %cst_47 : f32 to vector<16x1xf32>
    %133 = arith.divf %131, %132 : vector<16x1xf32>
    %cst_48 = arith.constant 9.99999974E-6 : f32
    %134 = vector.broadcast %cst_48 : f32 to vector<16x1xf32>
    %135 = arith.addf %133, %134 : vector<16x1xf32>
    %136 = math.rsqrt %135 : vector<16x1xf32>
    %137 = vector.broadcast %136 : vector<16x1xf32> to vector<16x32xf32>
    %138 = arith.mulf %128, %137 : vector<16x32xf32>
    %139 = vector.broadcast %14 : vector<1x32xf32> to vector<16x32xf32>
    %140 = arith.mulf %138, %139 : vector<16x32xf32>
    %141 = vector.broadcast %15 : vector<1x32xf32> to vector<16x32xf32>
    %142 = arith.addf %140, %141 : vector<16x32xf32>
    %c1_49 = arith.constant 1 : index
    %c0_50 = arith.constant 0 : index
    %c0_51 = arith.constant 0 : index
    %143 = vector.load %arg4[%c1_49, %c0_50, %c0_51] : memref<2x10x32xf32, #tpu.memory_space<vmem>>, vector<1x10x32xf32>
    %144 = vector.shape_cast %143 : vector<1x10x32xf32> to vector<10x32xf32>
    %145 = vector.extract_strided_slice %144 {offsets = [0, 0], sizes = [1, 32], strides = [1, 1]} : vector<10x32xf32> to vector<1x32xf32>
    %146 = vector.extract_strided_slice %144 {offsets = [1, 0], sizes = [1, 32], strides = [1, 1]} : vector<10x32xf32> to vector<1x32xf32>
    %147 = vector.extract_strided_slice %144 {offsets = [2, 0], sizes = [1, 32], strides = [1, 1]} : vector<10x32xf32> to vector<1x32xf32>
    %148 = vector.extract_strided_slice %144 {offsets = [3, 0], sizes = [1, 32], strides = [1, 1]} : vector<10x32xf32> to vector<1x32xf32>
    %149 = vector.extract_strided_slice %144 {offsets = [4, 0], sizes = [1, 32], strides = [1, 1]} : vector<10x32xf32> to vector<1x32xf32>
    %150 = vector.extract_strided_slice %144 {offsets = [5, 0], sizes = [1, 32], strides = [1, 1]} : vector<10x32xf32> to vector<1x32xf32>
    %151 = vector.extract_strided_slice %144 {offsets = [6, 0], sizes = [1, 32], strides = [1, 1]} : vector<10x32xf32> to vector<1x32xf32>
    %152 = vector.extract_strided_slice %144 {offsets = [7, 0], sizes = [1, 32], strides = [1, 1]} : vector<10x32xf32> to vector<1x32xf32>
    %153 = vector.extract_strided_slice %144 {offsets = [8, 0], sizes = [1, 32], strides = [1, 1]} : vector<10x32xf32> to vector<1x32xf32>
    %154 = vector.extract_strided_slice %144 {offsets = [9, 0], sizes = [1, 32], strides = [1, 1]} : vector<10x32xf32> to vector<1x32xf32>
    %c1_52 = arith.constant 1 : index
    %c0_53 = arith.constant 0 : index
    %c0_54 = arith.constant 0 : index
    %c0_55 = arith.constant 0 : index
    %155 = vector.load %arg3[%c1_52, %c0_53, %c0_54, %c0_55] : memref<2x6x32x32xf32, #tpu.memory_space<vmem>>, vector<1x1x32x32xf32>
    %156 = vector.shape_cast %155 : vector<1x1x32x32xf32> to vector<32x32xf32>
    %cst_56 = arith.constant dense<0.000000e+00> : vector<16x32xf32>
    %157 = tpu.matmul %142, %156, %cst_56 {dimension_numbers = #tpu.dot_dimension_numbers<[1], [0], [0], [1], [0, 0, 1, 1], [], []>} : vector<16x32xf32>, vector<32x32xf32>, vector<16x32xf32> -> vector<16x32xf32>
    %158 = vector.broadcast %145 : vector<1x32xf32> to vector<16x32xf32>
    %159 = arith.addf %157, %158 : vector<16x32xf32>
    %c1_57 = arith.constant 1 : index
    %c1_58 = arith.constant 1 : index
    %c0_59 = arith.constant 0 : index
    %c0_60 = arith.constant 0 : index
    %160 = vector.load %arg3[%c1_57, %c1_58, %c0_59, %c0_60] : memref<2x6x32x32xf32, #tpu.memory_space<vmem>>, vector<1x1x32x32xf32>
    %161 = vector.shape_cast %160 : vector<1x1x32x32xf32> to vector<32x32xf32>
    %cst_61 = arith.constant dense<0.000000e+00> : vector<16x32xf32>
    %162 = tpu.matmul %142, %161, %cst_61 {dimension_numbers = #tpu.dot_dimension_numbers<[1], [0], [0], [1], [0, 0, 1, 1], [], []>} : vector<16x32xf32>, vector<32x32xf32>, vector<16x32xf32> -> vector<16x32xf32>
    %163 = vector.broadcast %146 : vector<1x32xf32> to vector<16x32xf32>
    %164 = arith.addf %162, %163 : vector<16x32xf32>
    %c1_62 = arith.constant 1 : index
    %c2_63 = arith.constant 2 : index
    %c0_64 = arith.constant 0 : index
    %c0_65 = arith.constant 0 : index
    %165 = vector.load %arg3[%c1_62, %c2_63, %c0_64, %c0_65] : memref<2x6x32x32xf32, #tpu.memory_space<vmem>>, vector<1x1x32x32xf32>
    %166 = vector.shape_cast %165 : vector<1x1x32x32xf32> to vector<32x32xf32>
    %cst_66 = arith.constant dense<0.000000e+00> : vector<16x32xf32>
    %167 = tpu.matmul %142, %166, %cst_66 {dimension_numbers = #tpu.dot_dimension_numbers<[1], [0], [0], [1], [0, 0, 1, 1], [], []>} : vector<16x32xf32>, vector<32x32xf32>, vector<16x32xf32> -> vector<16x32xf32>
    %168 = vector.broadcast %147 : vector<1x32xf32> to vector<16x32xf32>
    %169 = arith.addf %167, %168 : vector<16x32xf32>
    %170 = vector.extract_strided_slice %159 {offsets = [0, 0], sizes = [16, 8], strides = [1, 1]} : vector<16x32xf32> to vector<16x8xf32>
    %171 = vector.extract_strided_slice %159 {offsets = [0, 8], sizes = [16, 8], strides = [1, 1]} : vector<16x32xf32> to vector<16x8xf32>
    %172 = vector.extract_strided_slice %159 {offsets = [0, 16], sizes = [16, 8], strides = [1, 1]} : vector<16x32xf32> to vector<16x8xf32>
    %173 = vector.extract_strided_slice %159 {offsets = [0, 24], sizes = [16, 8], strides = [1, 1]} : vector<16x32xf32> to vector<16x8xf32>
    %174 = vector.shape_cast %170 : vector<16x8xf32> to vector<1x16x8xf32>
    %175 = vector.shape_cast %171 : vector<16x8xf32> to vector<1x16x8xf32>
    %176 = vector.shape_cast %172 : vector<16x8xf32> to vector<1x16x8xf32>
    %177 = vector.shape_cast %173 : vector<16x8xf32> to vector<1x16x8xf32>
    %178 = tpu.concatenate %174, %175, %176, %177 in 0 : vector<1x16x8xf32>, vector<1x16x8xf32>, vector<1x16x8xf32>, vector<1x16x8xf32> -> vector<4x16x8xf32>
    %179 = vector.shape_cast %178 : vector<4x16x8xf32> to vector<8x8x8xf32>
    %180 = vector.extract_strided_slice %164 {offsets = [0, 0], sizes = [16, 8], strides = [1, 1]} : vector<16x32xf32> to vector<16x8xf32>
    %181 = vector.extract_strided_slice %164 {offsets = [0, 8], sizes = [16, 8], strides = [1, 1]} : vector<16x32xf32> to vector<16x8xf32>
    %182 = vector.extract_strided_slice %164 {offsets = [0, 16], sizes = [16, 8], strides = [1, 1]} : vector<16x32xf32> to vector<16x8xf32>
    %183 = vector.extract_strided_slice %164 {offsets = [0, 24], sizes = [16, 8], strides = [1, 1]} : vector<16x32xf32> to vector<16x8xf32>
    %184 = vector.shape_cast %180 : vector<16x8xf32> to vector<1x16x8xf32>
    %185 = vector.shape_cast %181 : vector<16x8xf32> to vector<1x16x8xf32>
    %186 = vector.shape_cast %182 : vector<16x8xf32> to vector<1x16x8xf32>
    %187 = vector.shape_cast %183 : vector<16x8xf32> to vector<1x16x8xf32>
    %188 = tpu.concatenate %184, %185, %186, %187 in 0 : vector<1x16x8xf32>, vector<1x16x8xf32>, vector<1x16x8xf32>, vector<1x16x8xf32> -> vector<4x16x8xf32>
    %189 = vector.shape_cast %188 : vector<4x16x8xf32> to vector<8x8x8xf32>
    %190 = vector.extract_strided_slice %169 {offsets = [0, 0], sizes = [16, 8], strides = [1, 1]} : vector<16x32xf32> to vector<16x8xf32>
    %191 = vector.extract_strided_slice %169 {offsets = [0, 8], sizes = [16, 8], strides = [1, 1]} : vector<16x32xf32> to vector<16x8xf32>
    %192 = vector.extract_strided_slice %169 {offsets = [0, 16], sizes = [16, 8], strides = [1, 1]} : vector<16x32xf32> to vector<16x8xf32>
    %193 = vector.extract_strided_slice %169 {offsets = [0, 24], sizes = [16, 8], strides = [1, 1]} : vector<16x32xf32> to vector<16x8xf32>
    %194 = vector.shape_cast %190 : vector<16x8xf32> to vector<1x16x8xf32>
    %195 = vector.shape_cast %191 : vector<16x8xf32> to vector<1x16x8xf32>
    %196 = vector.shape_cast %192 : vector<16x8xf32> to vector<1x16x8xf32>
    %197 = vector.shape_cast %193 : vector<16x8xf32> to vector<1x16x8xf32>
    %198 = tpu.concatenate %194, %195, %196, %197 in 0 : vector<1x16x8xf32>, vector<1x16x8xf32>, vector<1x16x8xf32>, vector<1x16x8xf32> -> vector<4x16x8xf32>
    %199 = vector.shape_cast %198 : vector<4x16x8xf32> to vector<8x8x8xf32>
    "tpu.trace_start"() <{level = 10 : i32, message = "nqd,nkd->nqk"}> : () -> ()
    %cst_67 = arith.constant dense<0.000000e+00> : vector<8x8x8xf32>
    %200 = tpu.matmul %179, %189, %cst_67 {dimension_numbers = #tpu.dot_dimension_numbers<[2], [2], [1], [1], [0, 0, 0, 1, 1, 1], [0], [0]>} : vector<8x8x8xf32>, vector<8x8x8xf32>, vector<8x8x8xf32> -> vector<8x8x8xf32>
    "tpu.trace_stop"() : () -> ()
    %201 = vector.broadcast %3 : vector<1x8x8xf32> to vector<8x8x8xf32>
    %202 = arith.addf %200, %201 : vector<8x8x8xf32>
    %cst_68 = arith.constant dense<0xFF800000> : vector<8x8xf32>
    %203 = vector.multi_reduction <maximumf>, %202, %cst_68 [2] : vector<8x8x8xf32> to vector<8x8xf32>
    %204 = vector.shape_cast %203 : vector<8x8xf32> to vector<8x8x1xf32>
    %205 = vector.broadcast %204 : vector<8x8x1xf32> to vector<8x8x8xf32>
    %206 = arith.subf %202, %205 : vector<8x8x8xf32>
    %207 = math.exp %206 : vector<8x8x8xf32>
    %cst_69 = arith.constant dense<0.000000e+00> : vector<8x8xf32>
    %208 = vector.multi_reduction <add>, %207, %cst_69 [2] : vector<8x8x8xf32> to vector<8x8xf32>
    %209 = vector.shape_cast %208 : vector<8x8xf32> to vector<8x8x1xf32>
    %210 = tpu.reciprocal %209 {approx = true} : vector<8x8x1xf32> -> vector<8x8x1xf32>
    %211 = vector.broadcast %210 : vector<8x8x1xf32> to vector<8x8x8xf32>
    %212 = arith.mulf %207, %211 : vector<8x8x8xf32>
    "tpu.trace_start"() <{level = 10 : i32, message = "nqk,nkd->nqd"}> : () -> ()
    %cst_70 = arith.constant dense<0.000000e+00> : vector<8x8x8xf32>
    %213 = tpu.matmul %212, %199, %cst_70 {dimension_numbers = #tpu.dot_dimension_numbers<[2], [1], [1], [2], [0, 0, 0, 1, 1, 2], [0], [0]>} : vector<8x8x8xf32>, vector<8x8x8xf32>, vector<8x8x8xf32> -> vector<8x8x8xf32>
    "tpu.trace_stop"() : () -> ()
    %214 = vector.shape_cast %213 : vector<8x8x8xf32> to vector<4x16x8xf32>
    %c1_71 = arith.constant 1 : index
    %c5_72 = arith.constant 5 : index
    %c0_73 = arith.constant 0 : index
    %c0_74 = arith.constant 0 : index
    %215 = vector.load %arg3[%c1_71, %c5_72, %c0_73, %c0_74] : memref<2x6x32x32xf32, #tpu.memory_space<vmem>>, vector<1x1x32x32xf32>
    %216 = vector.shape_cast %215 : vector<1x1x32x32xf32> to vector<32x32xf32>
    %217 = vector.shape_cast %216 : vector<32x32xf32> to vector<4x8x32xf32>
    "tpu.trace_start"() <{level = 10 : i32, message = "hnd,hdo->hno"}> : () -> ()
    %cst_75 = arith.constant dense<0.000000e+00> : vector<4x16x32xf32>
    %218 = tpu.matmul %214, %217, %cst_75 {dimension_numbers = #tpu.dot_dimension_numbers<[2], [1], [1], [2], [0, 0, 0, 1, 1, 2], [0], [0]>} : vector<4x16x8xf32>, vector<4x8x32xf32>, vector<4x16x32xf32> -> vector<4x16x32xf32>
    "tpu.trace_stop"() : () -> ()
    %cst_76 = arith.constant dense<0.000000e+00> : vector<16x32xf32>
    %219 = vector.multi_reduction <add>, %218, %cst_76 [0] : vector<4x16x32xf32> to vector<16x32xf32>
    %220 = vector.broadcast %148 : vector<1x32xf32> to vector<16x32xf32>
    %221 = arith.addf %219, %220 : vector<16x32xf32>
    %222 = arith.addf %142, %221 : vector<16x32xf32>
    %cst_77 = arith.constant dense<0.000000e+00> : vector<16xf32>
    %223 = vector.multi_reduction <add>, %222, %cst_77 [1] : vector<16x32xf32> to vector<16xf32>
    %224 = vector.shape_cast %223 : vector<16xf32> to vector<16x1xf32>
    %cst_78 = arith.constant 3.200000e+01 : f32
    %225 = vector.broadcast %cst_78 : f32 to vector<16x1xf32>
    %226 = arith.divf %224, %225 : vector<16x1xf32>
    %227 = vector.broadcast %226 : vector<16x1xf32> to vector<16x32xf32>
    %228 = arith.subf %222, %227 : vector<16x32xf32>
    %229 = arith.mulf %228, %228 : vector<16x32xf32>
    %cst_79 = arith.constant dense<0.000000e+00> : vector<16xf32>
    %230 = vector.multi_reduction <add>, %229, %cst_79 [1] : vector<16x32xf32> to vector<16xf32>
    %231 = vector.shape_cast %230 : vector<16xf32> to vector<16x1xf32>
    %cst_80 = arith.constant 3.200000e+01 : f32
    %232 = vector.broadcast %cst_80 : f32 to vector<16x1xf32>
    %233 = arith.divf %231, %232 : vector<16x1xf32>
    %cst_81 = arith.constant 9.99999974E-6 : f32
    %234 = vector.broadcast %cst_81 : f32 to vector<16x1xf32>
    %235 = arith.addf %233, %234 : vector<16x1xf32>
    %236 = math.rsqrt %235 : vector<16x1xf32>
    %237 = vector.broadcast %236 : vector<16x1xf32> to vector<16x32xf32>
    %238 = arith.mulf %228, %237 : vector<16x32xf32>
    %239 = vector.broadcast %151 : vector<1x32xf32> to vector<16x32xf32>
    %240 = arith.mulf %238, %239 : vector<16x32xf32>
    %241 = vector.broadcast %152 : vector<1x32xf32> to vector<16x32xf32>
    %242 = arith.addf %240, %241 : vector<16x32xf32>
    %c1_82 = arith.constant 1 : index
    %c3_83 = arith.constant 3 : index
    %c0_84 = arith.constant 0 : index
    %c0_85 = arith.constant 0 : index
    %243 = vector.load %arg3[%c1_82, %c3_83, %c0_84, %c0_85] : memref<2x6x32x32xf32, #tpu.memory_space<vmem>>, vector<1x1x32x32xf32>
    %244 = vector.shape_cast %243 : vector<1x1x32x32xf32> to vector<32x32xf32>
    %cst_86 = arith.constant dense<0.000000e+00> : vector<16x32xf32>
    %245 = tpu.matmul %242, %244, %cst_86 {dimension_numbers = #tpu.dot_dimension_numbers<[1], [0], [0], [1], [0, 0, 1, 1], [], []>} : vector<16x32xf32>, vector<32x32xf32>, vector<16x32xf32> -> vector<16x32xf32>
    %246 = vector.broadcast %149 : vector<1x32xf32> to vector<16x32xf32>
    %247 = arith.addf %245, %246 : vector<16x32xf32>
    %cst_87 = arith.constant 5.000000e-01 : f32
    %248 = vector.broadcast %cst_87 : f32 to vector<16x32xf32>
    %249 = arith.mulf %248, %247 : vector<16x32xf32>
    %cst_88 = arith.constant 0.707106769 : f32
    %250 = vector.broadcast %cst_88 : f32 to vector<16x32xf32>
    %251 = arith.mulf %247, %250 : vector<16x32xf32>
    %252 = math.erf %251 : vector<16x32xf32>
    %cst_89 = arith.constant 1.000000e+00 : f32
    %253 = vector.broadcast %cst_89 : f32 to vector<16x32xf32>
    %254 = arith.addf %253, %252 : vector<16x32xf32>
    %255 = arith.mulf %249, %254 : vector<16x32xf32>
    %c1_90 = arith.constant 1 : index
    %c4_91 = arith.constant 4 : index
    %c0_92 = arith.constant 0 : index
    %c0_93 = arith.constant 0 : index
    %256 = vector.load %arg3[%c1_90, %c4_91, %c0_92, %c0_93] : memref<2x6x32x32xf32, #tpu.memory_space<vmem>>, vector<1x1x32x32xf32>
    %257 = vector.shape_cast %256 : vector<1x1x32x32xf32> to vector<32x32xf32>
    %cst_94 = arith.constant dense<0.000000e+00> : vector<16x32xf32>
    %258 = tpu.matmul %255, %257, %cst_94 {dimension_numbers = #tpu.dot_dimension_numbers<[1], [0], [0], [1], [0, 0, 1, 1], [], []>} : vector<16x32xf32>, vector<32x32xf32>, vector<16x32xf32> -> vector<16x32xf32>
    %259 = vector.broadcast %150 : vector<1x32xf32> to vector<16x32xf32>
    %260 = arith.addf %258, %259 : vector<16x32xf32>
    %261 = arith.addf %242, %260 : vector<16x32xf32>
    %cst_95 = arith.constant dense<0.000000e+00> : vector<16xf32>
    %262 = vector.multi_reduction <add>, %261, %cst_95 [1] : vector<16x32xf32> to vector<16xf32>
    %263 = vector.shape_cast %262 : vector<16xf32> to vector<16x1xf32>
    %cst_96 = arith.constant 3.200000e+01 : f32
    %264 = vector.broadcast %cst_96 : f32 to vector<16x1xf32>
    %265 = arith.divf %263, %264 : vector<16x1xf32>
    %266 = vector.broadcast %265 : vector<16x1xf32> to vector<16x32xf32>
    %267 = arith.subf %261, %266 : vector<16x32xf32>
    %268 = arith.mulf %267, %267 : vector<16x32xf32>
    %cst_97 = arith.constant dense<0.000000e+00> : vector<16xf32>
    %269 = vector.multi_reduction <add>, %268, %cst_97 [1] : vector<16x32xf32> to vector<16xf32>
    %270 = vector.shape_cast %269 : vector<16xf32> to vector<16x1xf32>
    %cst_98 = arith.constant 3.200000e+01 : f32
    %271 = vector.broadcast %cst_98 : f32 to vector<16x1xf32>
    %272 = arith.divf %270, %271 : vector<16x1xf32>
    %cst_99 = arith.constant 9.99999974E-6 : f32
    %273 = vector.broadcast %cst_99 : f32 to vector<16x1xf32>
    %274 = arith.addf %272, %273 : vector<16x1xf32>
    %275 = math.rsqrt %274 : vector<16x1xf32>
    %276 = vector.broadcast %275 : vector<16x1xf32> to vector<16x32xf32>
    %277 = arith.mulf %267, %276 : vector<16x32xf32>
    %278 = vector.broadcast %153 : vector<1x32xf32> to vector<16x32xf32>
    %279 = arith.mulf %277, %278 : vector<16x32xf32>
    %280 = vector.broadcast %154 : vector<1x32xf32> to vector<16x32xf32>
    %281 = arith.addf %279, %280 : vector<16x32xf32>
    %c0_100 = arith.constant 0 : index
    %c0_101 = arith.constant 0 : index
    %282 = vector.load %arg5[%c0_100, %c0_101] : memref<2x32xf32, #tpu.memory_space<vmem>>, vector<1x32xf32>
    %c1_102 = arith.constant 1 : index
    %c0_103 = arith.constant 0 : index
    %283 = vector.load %arg5[%c1_102, %c0_103] : memref<2x32xf32, #tpu.memory_space<vmem>>, vector<1x32xf32>
    %cst_104 = arith.constant dense<0.000000e+00> : vector<16xf32>
    %284 = vector.multi_reduction <add>, %281, %cst_104 [1] : vector<16x32xf32> to vector<16xf32>
    %285 = vector.shape_cast %284 : vector<16xf32> to vector<16x1xf32>
    %cst_105 = arith.constant 3.200000e+01 : f32
    %286 = vector.broadcast %cst_105 : f32 to vector<16x1xf32>
    %287 = arith.divf %285, %286 : vector<16x1xf32>
    %288 = vector.broadcast %287 : vector<16x1xf32> to vector<16x32xf32>
    %289 = arith.subf %281, %288 : vector<16x32xf32>
    %290 = arith.mulf %289, %289 : vector<16x32xf32>
    %cst_106 = arith.constant dense<0.000000e+00> : vector<16xf32>
    %291 = vector.multi_reduction <add>, %290, %cst_106 [1] : vector<16x32xf32> to vector<16xf32>
    %292 = vector.shape_cast %291 : vector<16xf32> to vector<16x1xf32>
    %cst_107 = arith.constant 3.200000e+01 : f32
    %293 = vector.broadcast %cst_107 : f32 to vector<16x1xf32>
    %294 = arith.divf %292, %293 : vector<16x1xf32>
    %cst_108 = arith.constant 9.99999974E-6 : f32
    %295 = vector.broadcast %cst_108 : f32 to vector<16x1xf32>
    %296 = arith.addf %294, %295 : vector<16x1xf32>
    %297 = math.rsqrt %296 : vector<16x1xf32>
    %298 = vector.broadcast %297 : vector<16x1xf32> to vector<16x32xf32>
    %299 = arith.mulf %289, %298 : vector<16x32xf32>
    %300 = vector.broadcast %282 : vector<1x32xf32> to vector<16x32xf32>
    %301 = arith.mulf %299, %300 : vector<16x32xf32>
    %302 = vector.broadcast %283 : vector<1x32xf32> to vector<16x32xf32>
    %303 = arith.addf %301, %302 : vector<16x32xf32>
    %304 = vector.shape_cast %303 : vector<16x32xf32> to vector<2x8x32xf32>
    %c0_109 = arith.constant 0 : index
    %c0_110 = arith.constant 0 : index
    %c0_111 = arith.constant 0 : index
    %305 = vector.load %arg6[%c0_109, %c0_110, %c0_111] : memref<2x8x32xf32, #tpu.memory_space<vmem>>, vector<2x8x32xf32>
    tpu.vector_store %arg6[%c0_109, %c0_110, %c0_111], %304 {strides = array<i32>} : memref<2x8x32xf32, #tpu.memory_space<vmem>>, vector<2x8x32xf32>,
    return
  }
  func.func @transform_0(%arg0: i32) -> (i32, i32, i32) {
    %c0_i32 = arith.constant 0 : i32
    %c0_i32_0 = arith.constant 0 : i32
    %c0_i32_1 = arith.constant 0 : i32
    %c0_i32_2 = arith.constant 0 : i32
    return %c0_i32, %c0_i32_0, %c0_i32_1 : i32, i32, i32
  }
  func.func @transform_1(%arg0: i32) -> (i32, i32) {
    %c0_i32 = arith.constant 0 : i32
    %c0_i32_0 = arith.constant 0 : i32
    %c0_i32_1 = arith.constant 0 : i32
    return %c0_i32, %c0_i32_0 : i32, i32
  }
  func.func @transform_2(%arg0: i32) -> (i32, i32, i32, i32) {
    %c0_i32 = arith.constant 0 : i32
    %c0_i32_0 = arith.constant 0 : i32
    %c0_i32_1 = arith.constant 0 : i32
    %c0_i32_2 = arith.constant 0 : i32
    %c0_i32_3 = arith.constant 0 : i32
    return %c0_i32, %c0_i32_0, %c0_i32_1, %c0_i32_2 : i32, i32, i32, i32
  }
  func.func @transform_3(%arg0: i32) -> (i32, i32, i32) {
    %c0_i32 = arith.constant 0 : i32
    %c0_i32_0 = arith.constant 0 : i32
    %c0_i32_1 = arith.constant 0 : i32
    %c0_i32_2 = arith.constant 0 : i32
    return %c0_i32, %c0_i32_0, %c0_i32_1 : i32, i32, i32
  }
  func.func @transform_4(%arg0: i32) -> (i32, i32) {
    %c0_i32 = arith.constant 0 : i32
    %c0_i32_0 = arith.constant 0 : i32
    %c0_i32_1 = arith.constant 0 : i32
    return %c0_i32, %c0_i32_0 : i32, i32
  }
  func.func @transform_5(%arg0: i32) -> (i32, i32, i32) {
    %c0_i32 = arith.constant 0 : i32
    %c0_i32_0 = arith.constant 0 : i32
    %c0_i32_1 = arith.constant 0 : i32
    %c0_i32_2 = arith.constant 0 : i32
    return %c0_i32, %c0_i32_0, %c0_i32_1 : i32, i32, i32
  }
}

</mosaic_0001>

<bundles_post_ra>
// kernel: tpu_custom_call.1
= control target key start
LH: loop header
LB: loop body
LE: loop exit
PB: predicated region body
PF: predicated region fallthrough
CT: control target
= control target key end

     0   :  { %10 = vsyncpa [#allocation3], 0  ;;  %s5688_s0 = inlined_call_operand.vmem [shape: f32[2,8,32], index: 0, kind: input, shape index: {}]   ;;  %s5689_s1 = inlined_call_operand.vmem [shape: f32[8,8], index: 1, kind: input, shape index: {}]   ;;  %s5690_s2 = inlined_call_operand.hbm [shape: f32[2,6,32,32], index: 2, kind: input, shape index: {}]   ;;  %s5691_s3 = inlined_call_operand.vmem [shape: f32[2,10,32], index: 3, kind: input, shape index: {}]   ;;  %s5692_s4 = inlined_call_operand.vmem [shape: f32[2,32], index: 4, kind: input, shape index: {}]   ;;  %s5693_s5 = inlined_call_operand.hbm [shape: f32[2,8,32], index: 5, kind: output, shape index: {}]  }
   0x1   :  { %11 = vsyncpa [#allocation4], 0  ;;  %s5174_s18 = smov [#allocation2]  }
   0x2   :  { %s21_s19 = sshll.u32 %s5174_s18, 4  ;;  %s22_s19 = int_to_ptr.vmem [resolvable:$true] %s21_s19 }
   0x3   :  { %s5138_s20 = scalar_lea.vmem %s22_s19, 6144  ;;  %p5143_p1 = scmp.lt.s32.totalorder %s22_s19, %s22_s19 }
   0x4   :  { %p5139_p0 = scmp.ne.s32.totalorder %s22_s19, %s5138_s20  ;;  %p5144_p2 = scmp.lt.s32.totalorder %s5138_s20, %s5138_s20 }
   0x6   :  { %p5145_p3 = por %p5144_p2, %p5143_p1 }
   0x8   :  { %p5146_p4 = pnand %p5145_p3, %p5139_p0 }
   0xa   :  { %5149 = shalt.err (!%p5146_p4)
}
   0xb   :  { %s5175_s21 = smov 128   ;;  %s5176_s22 = smov 8  }
   0xc   :  { %27 = dma.hbm_to_vmem [thread:$0]  %s5690_s2, 6144, %s22_s19, [#allocation3], %s5175_s21, %s5175_s21, %s5176_s22  }
   0xd   :  { %5170 = dma.done.wait [#allocation3], 6144  }
   0xe   :  { %5171 = vsyncadd [#allocation3], 4294961152  ;;  %v43_v0 = vld [vmem:[#allocation2 + $0x18] sm:$0xff]  ;;  %v42_v2 = vld [vmem:[#allocation2 + $0x10] sm:$0xff]  ;;  %vm48_vm0 = vcmask 261120   ;;  %v5177_v10 = vmov 0.0   ;;  %v44_v13 = vlaneseq }
   0xf   :  { %v134_v1 = vld [vmem:[#allocation2 + $0x38] sm:$0xff]  ;;  %4718 = vmatprep.subr.mxu0 %v43_v0  ;;  %v133_v3 = vld [vmem:[#allocation2 + $0x30] sm:$0xff]  ;;  %v41_v4 = vld [vmem:[#allocation2 + $0x8] sm:$0xff]  ;;  %vm5178_vm1 = vmmov 0   ;;  %vm346_vm2 = vcmask 64512   ;;  %s5179_s29 = smov 120  }
  0x10   :  { %4729 = vmatprep.subr.mxu1 %v134_v1  ;;  %4719 = vmatpush3.msra.mxu0 %v43_v0  ;;  %v132_v5 = vld [vmem:[#allocation2 + $0x28] sm:$0xff]  ;;  %v40_v6 = vld [vmem:[#allocation2] sm:$0xff]  ;;  %v218_v11 = vld [vmem:[#allocation2 + $0x58] sm:$0xff]  ;;  %v5242_v15 = vshrl.u32 %v44_v13, 7  ;;  %s5180_s30 = smov 112   ;;  %s5181_s6 = smov 104  }
  0x11   :  { %4730 = vmatpush3.msra.mxu1 %v134_v1  ;;  %4720 = vmatprep.subr.mxu0 %v42_v2  ;;  %v131_v7 = vld [vmem:[#allocation2 + $0x20] sm:$0xff]  ;;  %v5227_v9 = vld [vmem:[%s5688_s0 + $0x8] sm:$0xff]  ;;  %v217_v12 = vld [vmem:[#allocation2 + $0x50] sm:$0xff]  ;;  %s5182_s19 = smov [#allocation5]  }
  0x12   :  { %4731 = vmatprep.subr.mxu1 %v133_v3  ;;  %4721 = vmatpush3.msra.mxu0 %v42_v2  ;;  %v5222_v8 = vld [vmem:[%s5688_s0] sm:$0xff]  ;;  %v216_v14 = vld [vmem:[#allocation2 + $0x48] sm:$0xff]  ;;  %v5245_v17 = vsub.s32 0, %v5242_v15  ;;  %v5248_v18 = vsub.s32 1, %v5242_v15  ;;  %v221_v42 = vsub.s32 2, %v5242_v15  ;;  %s4470_s20 = sshll.u32 %s5182_s19, 4  ;;  %s4471_s20 = int_to_ptr.vmem [resolvable:$true] %s4470_s20 }
  0x13   :  { %4732 = vmatpush3.msra.mxu1 %v133_v3  ;;  %4722 = vmatprep.subr.mxu0 %v41_v4  ;;  %v215_v16 = vld [vmem:[#allocation2 + $0x40] sm:$0xff]  ;;  %s5150_s23 = scalar_lea.vmem %s4471_s20, 256  ;;  %p5155_p6 = scmp.lt.s32.totalorder %s4471_s20, %s4471_s20 }
  0x14   :  { %4733 = vmatprep.subr.mxu1 %v132_v5  ;;  %4723 = vmatpush3.msra.mxu0 %v41_v4  ;;  %v5256_v19 = vld [vmem:[%s5691_s3] sm:$0xff]  ;;  %p5151_p5 = scmp.ne.s32.totalorder %s4471_s20, %s5150_s23  ;;  %p5156_p7 = scmp.lt.s32.totalorder %s5150_s23, %s5150_s23 }
  0x15   :  { %4734 = vmatpush3.msra.mxu1 %v132_v5  ;;  %4724 = vmatprep.subr.mxu0 %v40_v6  ;;  %v47_v20 = vrot.slane %v5256_v19, %v5245_v17  ;;  %v138_v21 = vrot.slane %v5256_v19, %v5248_v18  ;;  %v222_v43 = vrot.slane %v5256_v19, %v221_v42  ;;  %v5331_v48 = vld [vmem:[%s5689_s1] sm:$0xff] }
  0x16   :  { %4735 = vmatprep.subr.mxu1 %v131_v7  ;;  %4725 = vmatpush3.msra.mxu0 %v40_v6  ;;  %p5157_p8 = por %p5156_p7, %p5155_p6 }
  0x17   :  { %4726 = vmatprep.mubr.msk.f32.mxu0 %vm48_vm0, %v5222_v8  ;;  %4736 = vmatpush3.msra.mxu1 %v131_v7 }
  0x18   :  { %4737 = vmatprep.mubr.msk.f32.mxu1 %vm48_vm0, %v5222_v8  ;;  %4727 = vmatmul.mubr.msk.f32.vlgmr.msra.gmra.mxu0 %vm48_vm0, %v5227_v9  ;;  %p5158_p9 = pnand %p5157_p8, %p5151_p5 }
  0x19   :  { %4738 = vmatmul.mubr.msk.f32.vlgmr.msra.gmra.mxu1 %vm48_vm0, %v5227_v9  ;;  %4748 = vmatprep.mubr.msk.f32.mxu0 %vm48_vm0, %v5222_v8 }
  0x1a   :  { %4751 = vmatprep.subr.mxu1 %v5177_v10  ;;  %4753 = vmatprep.mubr.msk.f32.mxu1 %vm5178_vm1, %v5177_v10 }
  0x1b   :  { %4740 = vmatprep.subr.mxu0 %v218_v11 }
  0x1c   :  { %4741 = vmatpush3.msra.mxu0 %v218_v11 }
  0x1d   :  { %4742 = vmatprep.subr.mxu0 %v217_v12 }
  0x1e   :  { %4743 = vmatpush3.msra.mxu0 %v217_v12 }
  0x1f   :  { %4744 = vmatprep.subr.mxu0 %v216_v14 }
  0x20   :  { %4745 = vmatpush3.msra.mxu0 %v216_v14 }
  0x21   :  { %4746 = vmatprep.subr.mxu0 %v215_v16 }
  0x22   :  { %4747 = vmatpush3.msra.mxu0 %v215_v16 }
  0x23   :  { %4749 = vmatmul.mubr.msk.f32.vlgmr.msra.gmra.mxu0 %vm48_vm0, %v5227_v9  ;;  %4761 = vmatprep.subr.mxu0 %v5177_v10 }
  0x24   :  { %4763 = vmatprep.mubr.msk.f32.mxu0 %vm5178_vm1, %v5177_v10 }
  0xd8   :  { %v4728_v22 = vpop.f32.mrf.mxu0 }
  0xd9   :  { %v4739_v23 = vpop.f32.mrf.mxu1  ;;  %v127_v24 = vadd.f32 %v4728_v22, %v47_v20 }
  0xda   :  { %v211_v25 = vadd.f32 %v4739_v23, %v138_v21  ;;  %v121_v27 = vpop.f32.mrf.mxu0 }
  0xdb   :  { %v205_v26 = vpop.f32.mrf.mxu1  ;;  %302 = vrot.lane.b32.xlu1 %v127_v24, %s5179_s29  ;;  %v122_v29 = vadd.f32 %v121_v27, %v47_v20 }
  0xdc   :  { %v206_v28 = vadd.f32 %v205_v26, %v138_v21  ;;  %316 = vrot.lane.b32.xlu0 %v211_v25, %s5179_s29 }
  0xde   :  { %4752 = vmatpush3.xpose.msk.msra.mxu1 %vm346_vm2, %v206_v28 }
  0xdf   :  { %4756 = vmatprep.subr.mxu1 %v5177_v10  ;;  %320 = vrot.lane.b32.xlu1 %v211_v25, %s5180_s30 }
  0xe0   :  { %314 = vrot.lane.b32.xlu0 %v206_v28, %s5179_s29 }
  0xe1   :  { %4754 = vmatmul.mubr.msk.f32.vlgmr.msra.gmra.mxu1 %vm346_vm2, %v122_v29 }
  0xe2   :  { %4757 = vmatpush3.xpose.msk.msra.mxu1 %vm346_vm2, %v211_v25  ;;  %4758 = vmatprep.mubr.msk.f32.mxu1 %vm5178_vm1, %v5177_v10 }
  0xe3   :  { %4766 = vmatprep.subr.mxu1 %v5177_v10  ;;  %300 = vrot.lane.b32.xlu1 %v122_v29, %s5179_s29  ;;  %v4750_v44 = vpop.f32.mrf.mxu0 }
  0xe4   :  { %318 = vrot.lane.b32.xlu0 %v206_v28, %s5180_s30  ;;  %v5320_v45 = vadd.f32 %v4750_v44, %v222_v43 }
  0xe5   :  { %4759 = vmatmul.mubr.msk.f32.vlgmr.msra.gmra.mxu1 %vm346_vm2, %v127_v24  ;;  %v289_v46 = vpop.f32.mrf.mxu0 }
  0xe6   :  { %4768 = vmatprep.mubr.msk.f32.mxu1 %vm5178_vm1, %v5177_v10  ;;  %v5322_v47 = vadd.f32 %v289_v46, %v222_v43 }
  0xe7   :  { %306 = vrot.lane.b32.xlu1 %v127_v24, %s5180_s30 }
  0xe8   :  { %304 = vrot.lane.b32.xlu0 %v122_v29, %s5180_s30 }
  0xeb   :  { %324 = vrot.lane.b32.xlu1 %v211_v25, %s5181_s6 }
  0xec   :  { %322 = vrot.lane.b32.xlu0 %v206_v28, %s5181_s6 }
  0xef   :  { %310 = vrot.lane.b32.xlu1 %v127_v24, %s5181_s6 }
  0xf0   :  { %308 = vrot.lane.b32.xlu0 %v122_v29, %s5181_s6 }
 0x14d   :  { %v303_v31 = vpop.permute.xlu1 %302 }
 0x14e   :  { %v317_v30 = vpop.permute.xlu0 %316 }
 0x14f   :  { %4767 = vmatpush3.xpose.msk.msra.mxu1 %vm346_vm2, %v317_v30 }
 0x150   :  { %4776 = vmatprep.subr.mxu1 %v5177_v10 }
 0x151   :  { %v321_v33 = vpop.permute.xlu1 %320 }
 0x152   :  { %v315_v32 = vpop.permute.xlu0 %314  ;;  %4769 = vmatmul.mubr.msk.f32.vlgmr.msra.gmra.mxu1 %vm346_vm2, %v303_v31 }
 0x153   :  { %4762 = vmatpush3.xpose.msk.msra.mxu0 %vm346_vm2, %v315_v32  ;;  %4777 = vmatpush3.xpose.msk.msra.mxu1 %vm346_vm2, %v321_v33 }
 0x154   :  { %4771 = vmatprep.subr.mxu0 %v5177_v10  ;;  %4778 = vmatprep.mubr.msk.f32.mxu1 %vm5178_vm1, %v5177_v10 }
 0x155   :  { %4786 = vmatprep.subr.mxu1 %v5177_v10  ;;  %v301_v35 = vpop.permute.xlu1 %300 }
 0x156   :  { %v319_v34 = vpop.permute.xlu0 %318  ;;  %4764 = vmatmul.mubr.msk.f32.vlgmr.msra.gmra.mxu0 %vm346_vm2, %v301_v35 }
 0x157   :  { %4772 = vmatpush3.xpose.msk.msra.mxu0 %vm346_vm2, %v319_v34  ;;  %4773 = vmatprep.mubr.msk.f32.mxu0 %vm5178_vm1, %v5177_v10 }
 0x158   :  { %4781 = vmatprep.subr.mxu0 %v5177_v10 }
 0x159   :  { %v307_v37 = vpop.permute.xlu1 %306 }
 0x15a   :  { %v305_v36 = vpop.permute.xlu0 %304  ;;  %4779 = vmatmul.mubr.msk.f32.vlgmr.msra.gmra.mxu1 %vm346_vm2, %v307_v37 }
 0x15b   :  { %4774 = vmatmul.mubr.msk.f32.vlgmr.msra.gmra.mxu0 %vm346_vm2, %v305_v36  ;;  %4788 = vmatprep.mubr.msk.f32.mxu1 %vm5178_vm1, %v5177_v10 }
 0x15c   :  { %4783 = vmatprep.mubr.msk.f32.mxu0 %vm5178_vm1, %v5177_v10 }
 0x15d   :  { %v325_v39 = vpop.permute.xlu1 %324 }
 0x15e   :  { %v323_v38 = vpop.permute.xlu0 %322  ;;  %4787 = vmatpush3.xpose.msk.msra.mxu1 %vm346_vm2, %v325_v39 }
 0x15f   :  { %4782 = vmatpush3.xpose.msk.msra.mxu0 %vm346_vm2, %v323_v38  ;;  %4796 = vmatprep.subr.mxu1 %v5177_v10 }
 0x160   :  { %4791 = vmatprep.subr.mxu0 %v5177_v10 }
 0x161   :  { %v311_v41 = vpop.permute.xlu1 %310 }
 0x162   :  { %v309_v40 = vpop.permute.xlu0 %308  ;;  %4789 = vmatmul.mubr.msk.f32.vlgmr.msra.gmra.mxu1 %vm346_vm2, %v311_v41 }
 0x163   :  { %4784 = vmatmul.mubr.msk.f32.vlgmr.msra.gmra.mxu0 %vm346_vm2, %v309_v40  ;;  %4798 = vmatprep.mubr.msk.f32.mxu1 %vm5178_vm1, %v5177_v10 }
 0x164   :  { %4793 = vmatprep.mubr.msk.f32.mxu0 %vm5178_vm1, %v5177_v10  ;;  %4797 = vmatpush3.msra.mxu1 %v5320_v45 }
 0x165   :  { %4806 = vmatprep.subr.mxu1 %v5177_v10  ;;  %4792 = vmatpush3.msra.mxu0 %v5322_v47 }
 0x166   :  { %4801 = vmatprep.subr.mxu0 %v5177_v10 }
 0x1a1   :  { %v417_v49 = vpop.f32.mrf.mxu1 }
 0x1a2   :  { %v418_v50 = vadd.f32 %v417_v49, %v5331_v48 }
 0x1a3   :  { %v4755_v51 = vpop.f32.mrf.mxu1 }
 0x1a4   :  { %v939_v52 = vsel %vm346_vm2, %v418_v50, -inf }
 0x1a5   :  { %940 = vmax.xlane.f32.xlu0 %v939_v52  ;;  %v491_v53 = vpop.f32.mrf.mxu1 }
 0x1a6   :  { %v492_v54 = vadd.f32 %v491_v53, %v5331_v48 }
 0x1a7   :  { %v4760_v55 = vpop.f32.mrf.mxu1 }
 0x1a8   :  { %v942_v56 = vsel %vm346_vm2, %v492_v54, -inf }
 0x1a9   :  { %943 = vmax.xlane.f32.xlu1 %v942_v56 }
 0x212   :  { %v639_v57 = vpop.f32.mrf.mxu1 }
 0x213   :  { %v640_v62 = vadd.f32 %v639_v57, %v5331_v48 }
 0x214   :  { %v4770_v58 = vpop.f32.mrf.mxu1 }
 0x215   :  { %v948_v7 = vsel %vm346_vm2, %v640_v62, -inf }
 0x216   :  { %v565_v59 = vpop.f32.mrf.mxu0 }
 0x217   :  { %v566_v60 = vadd.f32 %v565_v59, %v5331_v48 }
 0x218   :  { %v4765_v61 = vpop.f32.mrf.mxu0 }
 0x219   :  { %v945_v63 = vsel %vm346_vm2, %v566_v60, -inf }
 0x21a   :  { %946 = vmax.xlane.f32.xlu0 %v945_v63  ;;  %v787_v1 = vpop.f32.mrf.mxu1 }
 0x21b   :  { %v713_v0 = vpop.f32.mrf.mxu0  ;;  %v788_v5 = vadd.f32 %v787_v1, %v5331_v48 }
 0x21c   :  { %v714_v2 = vadd.f32 %v713_v0, %v5331_v48  ;;  %v4780_v4 = vpop.f32.mrf.mxu1 }
 0x21d   :  { %v4775_v3 = vpop.f32.mrf.mxu0  ;;  %v954_v11 = vsel %vm346_vm2, %v788_v5, -inf }
 0x21e   :  { %v951_v6 = vsel %vm346_vm2, %v714_v2, -inf  ;;  %949 = vmax.xlane.f32.xlu0 %v948_v7 }
 0x21f   :  { %952 = vmax.xlane.f32.xlu1 %v951_v6 }
 0x222   :  { %955 = vmax.xlane.f32.xlu0 %v954_v11  ;;  %v935_v13 = vpop.f32.mrf.mxu1 }
 0x223   :  { %v861_v12 = vpop.f32.mrf.mxu0  ;;  %v936_v16 = vadd.f32 %v935_v13, %v5331_v48 }
 0x224   :  { %v862_v14 = vadd.f32 %v861_v12, %v5331_v48  ;;  %v4790_v21 = vpop.f32.mrf.mxu1 }
 0x225   :  { %v4785_v20 = vpop.f32.mrf.mxu0  ;;  %v960_v23 = vsel %vm346_vm2, %v936_v16, -inf }
 0x226   :  { %v957_v22 = vsel %vm346_vm2, %v862_v14, -inf  ;;  %961 = vmax.xlane.f32.xlu0 %v960_v23 }
 0x227   :  { %958 = vmax.xlane.f32.xlu1 %v957_v22 }
 0x22e   :  { %v941_v27 = vpop.xlane.xlu0 %940 }
 0x22f   :  { %v963_v28 = vsub.f32 %v418_v50, %v941_v27 }
 0x231   :  { %v971_v29 = vmul.f32 1.442695, %v963_v28 }
 0x232   :  { %v944_v24 = vpop.xlane.xlu1 %943 }
 0x233   :  { %v964_v25 = vsub.f32 %v492_v54, %v944_v24 }
 0x235   :  { %v973_v26 = vmul.f32 1.442695, %v964_v25 }
 0x237   :  { %5037 = vpow2.f32 %v973_v26 }
 0x238   :  { %328 = vrot.lane.b32.xlu1 %v5322_v47, %s5179_s29  ;;  %5039 = vpow2.f32 %v971_v29 }
 0x23c   :  { %334 = vrot.lane.b32.xlu1 %v5322_v47, %s5180_s30  ;;  %330 = vrot.lane.b32.xlu0 %v5320_v45, %s5179_s29 }
 0x240   :  { %336 = vrot.lane.b32.xlu1 %v5320_v45, %s5180_s30 }
 0x244   :  { %v5038_v30 = vpop.eup %5037 }
 0x245   :  { %v990_v31 = vsel %vm346_vm2, %v5038_v30, 0.0  ;;  %v5040_v32 = vpop.eup %5039 }
 0x246   :  { %v987_v33 = vsel %vm346_vm2, %v5040_v32, 0.0 }
 0x25b   :  { %991 = vadd.xlane.f32.xlu0 %v990_v31 }
 0x264   :  { %988 = vadd.xlane.f32.xlu1 %v987_v33 }
 0x2a3   :  { %v947_v34 = vpop.xlane.xlu0 %946 }
 0x2a4   :  { %v965_v35 = vsub.f32 %v566_v60, %v947_v34 }
 0x2a6   :  { %v975_v36 = vmul.f32 1.442695, %v965_v35 }
 0x2a7   :  { %v950_v38 = vpop.xlane.xlu0 %949 }
 0x2a8   :  { %v953_v37 = vpop.xlane.xlu1 %952  ;;  %5041 = vpow2.f32 %v975_v36  ;;  %v966_v40 = vsub.f32 %v640_v62, %v950_v38 }
 0x2a9   :  { %v967_v39 = vsub.f32 %v714_v2, %v953_v37 }
 0x2aa   :  { %v977_v43 = vmul.f32 1.442695, %v966_v40  ;;  %v1613_v40 = vld [vmem:[#allocation2 + $0xa8] sm:$0xff] }
 0x2ab   :  { %v979_v41 = vmul.f32 1.442695, %v967_v39  ;;  %v956_v44 = vpop.xlane.xlu0 %955 }
 0x2ac   :  { %v968_v46 = vsub.f32 %v788_v5, %v956_v44 }
 0x2ad   :  { %5043 = vpow2.f32 %v979_v41  ;;  %v1614_v41 = vld [vmem:[#allocation2 + $0xb0] sm:$0xff] }
 0x2ae   :  { %5045 = vpow2.f32 %v977_v43  ;;  %v981_v49 = vmul.f32 1.442695, %v968_v46  ;;  %v1615_v43 = vld [vmem:[#allocation2 + $0xb8] sm:$0xff] }
 0x2af   :  { %v962_v51 = vpop.xlane.xlu0 %961 }
 0x2b0   :  { %v959_v50 = vpop.xlane.xlu1 %958  ;;  %5047 = vpow2.f32 %v981_v49  ;;  %v970_v53 = vsub.f32 %v936_v16, %v962_v51 }
 0x2b1   :  { %v969_v52 = vsub.f32 %v862_v14, %v959_v50 }
 0x2b2   :  { %v985_v55 = vmul.f32 1.442695, %v970_v53 }
 0x2b3   :  { %v983_v54 = vmul.f32 1.442695, %v969_v52  ;;  %v331_v5 = vpop.permute.xlu0 %330 }
 0x2b4   :  { %v329_v4 = vpop.permute.xlu1 %328 }
 0x2b5   :  { %5049 = vpow2.f32 %v983_v54  ;;  %v5042_v56 = vpop.eup %5041 }
 0x2b6   :  { %5051 = vpow2.f32 %v985_v55  ;;  %v993_v57 = vsel %vm346_vm2, %v5042_v56, 0.0 }
 0x2b7   :  { %994 = vadd.xlane.f32.xlu1 %v993_v57 }
 0x2b8   :  { %v335_v6 = vpop.permute.xlu1 %334 }
 0x2ba   :  { %v5044_v58 = vpop.eup %5043 }
 0x2bb   :  { %v5046_v59 = vpop.eup %5045  ;;  %v999_v60 = vsel %vm346_vm2, %v5044_v58, 0.0 }
 0x2bc   :  { %1000 = vadd.xlane.f32.xlu1 %v999_v60  ;;  %v996_v61 = vsel %vm346_vm2, %v5046_v59, 0.0  ;;  %v337_v11 = vpop.permute.xlu1 %336 }
 0x2bd   :  { %997 = vadd.xlane.f32.xlu0 %v996_v61  ;;  %v5048_v62 = vpop.eup %5047 }
 0x2be   :  { %v1002_v63 = vsel %vm346_vm2, %v5048_v62, 0.0 }
 0x2c1   :  { %1003 = vadd.xlane.f32.xlu0 %v1002_v63 }
 0x2c2   :  { %v5363_v0 = vpop.eup %5049 }
 0x2c3   :  { %v5365_v1 = vpop.eup %5051  ;;  %v1005_v2 = vsel %vm346_vm2, %v5363_v0, 0.0 }
 0x2c4   :  { %1006 = vadd.xlane.f32.xlu1 %v1005_v2  ;;  %v1008_v3 = vsel %vm346_vm2, %v5365_v1, 0.0 }
 0x2c5   :  { %1009 = vadd.xlane.f32.xlu0 %v1008_v3 }
 0x2d5   :  { %342 = vrot.lane.b32.xlu1 %v5320_v45, %s5181_s6 }
 0x2db   :  { %340 = vrot.lane.b32.xlu0 %v5322_v47, %s5181_s6 }
 0x2e4   :  { %v992_v7 = vpop.xlane.xlu0 %991 }
 0x2e5   :  { %5053 = vrcp.f32 %v992_v7 }
 0x2ed   :  { %v989_v12 = vpop.xlane.xlu1 %988 }
 0x2ee   :  { %5055 = vrcp.f32 %v989_v12 }
 0x2f2   :  { %v5054_v13 = vpop.eup %5053 }
 0x2f3   :  { %v1020_v14 = vmul.f32 %v5054_v13, %v5038_v30 }
 0x2f5   :  { %4799 = vmatmul.mubr.msk.f32.vlgmr.msra.gmra.mxu1 %vm346_vm2, %v1020_v14 }
 0x2f6   :  { %4807 = vmatpush3.msra.mxu1 %v331_v5  ;;  %4808 = vmatprep.mubr.msk.f32.mxu1 %vm5178_vm1, %v5177_v10  ;;  %v1956_v5 = vsub.s32 3, %v5242_v15 }
 0x2f7   :  { %4816 = vmatprep.subr.mxu1 %v5177_v10 }
 0x2fb   :  { %v5056_v45 = vpop.eup %5055 }
 0x2fc   :  { %v1019_v47 = vmul.f32 %v5056_v45, %v5040_v32  ;;  %v1612_v32 = vld [vmem:[#allocation2 + $0xa0] sm:$0xff] }
 0x2fe   :  { %4794 = vmatmul.mubr.msk.f32.vlgmr.msra.gmra.mxu0 %vm346_vm2, %v1019_v47 }
 0x2ff   :  { %4802 = vmatpush3.msra.mxu0 %v329_v4  ;;  %4803 = vmatprep.mubr.msk.f32.mxu0 %vm5178_vm1, %v5177_v10 }
 0x300   :  { %4811 = vmatprep.subr.mxu0 %v5177_v10 }
 0x340   :  { %v995_v16 = vpop.xlane.xlu1 %994 }
 0x341   :  { %5057 = vrcp.f32 %v995_v16 }
 0x345   :  { %v1001_v20 = vpop.xlane.xlu1 %1000 }
 0x346   :  { %5059 = vrcp.f32 %v1001_v20  ;;  %v998_v21 = vpop.xlane.xlu0 %997 }
 0x347   :  { %5061 = vrcp.f32 %v998_v21  ;;  %v1957_v21 = vrot.slane %v5256_v19, %v1956_v5 }
 0x34a   :  { %v1004_v22 = vpop.xlane.xlu0 %1003 }
 0x34b   :  { %5063 = vrcp.f32 %v1004_v22 }
 0x34d   :  { %v1007_v23 = vpop.xlane.xlu1 %1006 }
 0x34e   :  { %5065 = vrcp.f32 %v1007_v23  ;;  %v1010_v24 = vpop.xlane.xlu0 %1009  ;;  %v5058_v25 = vpop.eup %5057 }
 0x34f   :  { %5067 = vrcp.f32 %v1010_v24  ;;  %v1021_v26 = vmul.f32 %v5058_v25, %v5042_v56 }
 0x351   :  { %4804 = vmatmul.mubr.msk.f32.vlgmr.msra.gmra.mxu0 %vm346_vm2, %v1021_v26  ;;  %v343_v36 = vpop.permute.xlu1 %342 }
 0x352   :  { %4812 = vmatpush3.msra.mxu0 %v335_v6  ;;  %4813 = vmatprep.mubr.msk.f32.mxu0 %vm5178_vm1, %v5177_v10  ;;  %v341_v31 = vpop.permute.xlu0 %340 }
 0x353   :  { %v5060_v27 = vpop.eup %5059  ;;  %4821 = vmatprep.subr.mxu0 %v5177_v10 }
 0x354   :  { %v5062_v28 = vpop.eup %5061  ;;  %v1023_v29 = vmul.f32 %v5060_v27, %v5044_v58 }
 0x355   :  { %v1022_v30 = vmul.f32 %v5062_v28, %v5046_v59 }
 0x356   :  { %4814 = vmatmul.mubr.msk.f32.vlgmr.msra.gmra.mxu0 %vm346_vm2, %v1023_v29 }
 0x357   :  { %4809 = vmatmul.mubr.msk.f32.vlgmr.msra.gmra.mxu1 %vm346_vm2, %v1022_v30  ;;  %4822 = vmatpush3.msra.mxu0 %v341_v31 }
 0x358   :  { %v5064_v33 = vpop.eup %5063  ;;  %4817 = vmatpush3.msra.mxu1 %v337_v11  ;;  %4818 = vmatprep.mubr.msk.f32.mxu1 %vm5178_vm1, %v5177_v10 }
 0x359   :  { %4826 = vmatprep.subr.mxu1 %v5177_v10  ;;  %v1024_v34 = vmul.f32 %v5064_v33, %v5048_v62  ;;  %4823 = vmatprep.mubr.msk.f32.mxu0 %vm5178_vm1, %v5177_v10 }
 0x35a   :  { %4831 = vmatprep.subr.mxu0 %v1612_v32 }
 0x35b   :  { %v5066_v35 = vpop.eup %5065  ;;  %4819 = vmatmul.mubr.msk.f32.vlgmr.msra.gmra.mxu1 %vm346_vm2, %v1024_v34 }
 0x35c   :  { %v5068_v37 = vpop.eup %5067  ;;  %4827 = vmatpush3.msra.mxu1 %v343_v36  ;;  %4828 = vmatprep.mubr.msk.f32.mxu1 %vm5178_vm1, %v5177_v10  ;;  %v1025_v38 = vmul.f32 %v5066_v35, %v5363_v0 }
 0x35d   :  { %v1026_v39 = vmul.f32 %v5068_v37, %v5365_v1  ;;  %4836 = vmatprep.subr.mxu1 %v1613_v40 }
 0x35e   :  { %4824 = vmatmul.mubr.msk.f32.vlgmr.msra.gmra.mxu0 %vm346_vm2, %v1025_v38 }
 0x35f   :  { %4829 = vmatmul.mubr.msk.f32.vlgmr.msra.gmra.mxu1 %vm346_vm2, %v1026_v39  ;;  %4832 = vmatpush3.msra.mxu0 %v1612_v32 }
 0x360   :  { %4837 = vmatpush3.msra.mxu1 %v1613_v40  ;;  %4841 = vmatprep.subr.mxu0 %v1614_v41 }
 0x361   :  { %4846 = vmatprep.subr.mxu1 %v1615_v43 }
 0x3b5   :  { %v1169_v44 = vpop.f32.mrf.mxu1 }
 0x3b7   :  { %v4800_v46 = vpop.f32.mrf.mxu1 }
 0x3b8   :  { %v2003_v46 = vld [vmem:[#allocation2 + $0x68] sm:$0xff] }
 0x3be   :  { %v1096_v49 = vpop.f32.mrf.mxu0 }
 0x3bf   :  { %4833 = vmatprep.mubr.msk.f32.mxu0 %vm346_vm2, %v1096_v49  ;;  %v2002_v49 = vld [vmem:[#allocation2 + $0x60] sm:$0xff] }
 0x3c0   :  { %v4795_v50 = vpop.f32.mrf.mxu0  ;;  %4834 = vmatmul.mubr.msk.f32.vlgmr.msra.gmra.mxu0 %vm346_vm2, %v1169_v44  ;;  %v2005_v44 = vld [vmem:[#allocation2 + $0x78] sm:$0xff] }
 0x3c1   :  { %4842 = vmatpush3.msra.mxu0 %v1614_v41 }
 0x3c2   :  { %4851 = vmatprep.subr.mxu0 %v2005_v44 }
 0x411   :  { %v1242_v51 = vpop.f32.mrf.mxu0 }
 0x412   :  { %4838 = vmatprep.mubr.msk.f32.mxu1 %vm346_vm2, %v1242_v51 }
 0x413   :  { %v4805_v52 = vpop.f32.mrf.mxu0 }
 0x416   :  { %v1388_v53 = vpop.f32.mrf.mxu0 }
 0x417   :  { %v1315_v54 = vpop.f32.mrf.mxu1  ;;  %4843 = vmatprep.mubr.msk.f32.mxu0 %vm346_vm2, %v1388_v53 }
 0x418   :  { %4839 = vmatmul.mubr.msk.f32.vlgmr.msra.gmra.mxu1 %vm346_vm2, %v1315_v54  ;;  %v4815_v55 = vpop.f32.mrf.mxu0 }
 0x419   :  { %v4810_v56 = vpop.f32.mrf.mxu1  ;;  %4847 = vmatpush3.msra.mxu1 %v1615_v43 }
 0x41a   :  { %v1991_v56 = vsub.s32 6, %v5242_v15 }
 0x41b   :  { %v1461_v57 = vpop.f32.mrf.mxu1 }
 0x41c   :  { %4844 = vmatmul.mubr.msk.f32.vlgmr.msra.gmra.mxu0 %vm346_vm2, %v1461_v57  ;;  %v1997_v57 = vsub.s32 7, %v5242_v15 }
 0x41d   :  { %v4820_v58 = vpop.f32.mrf.mxu1  ;;  %4852 = vmatpush3.msra.mxu0 %v2005_v44 }
 0x41e   :  { %v1534_v59 = vpop.f32.mrf.mxu0  ;;  %v1992_v58 = vrot.slane %v5256_v19, %v1991_v56 }
 0x41f   :  { %v1607_v60 = vpop.f32.mrf.mxu1  ;;  %4848 = vmatprep.mubr.msk.f32.mxu1 %vm346_vm2, %v1534_v59 }
 0x420   :  { %v4825_v61 = vpop.f32.mrf.mxu0  ;;  %4849 = vmatmul.mubr.msk.f32.vlgmr.msra.gmra.mxu1 %vm346_vm2, %v1607_v60 }
 0x421   :  { %v4830_v62 = vpop.f32.mrf.mxu1  ;;  %v1998_v61 = vrot.slane %v5256_v19, %v1997_v57 }
 0x480   :  { %v4835_v63 = vpop.f32.mrf.mxu0 }
 0x481   :  { %v1947_v6 = vsel %vm48_vm0, %v4835_v63, 0.0 }
 0x482   :  { %v1688_v1 = vpop.f32.mrf.mxu0 }
 0x483   :  { %v1940_v14 = vsel %vm48_vm0, %v1688_v1, 0.0 }
 0x4d8   :  { %v4840_v0 = vpop.f32.mrf.mxu1 }
 0x4d9   :  { %v1948_v3 = vsel %vm48_vm0, %v4840_v0, 0.0 }
 0x4da   :  { %v1769_v2 = vpop.f32.mrf.mxu1  ;;  %v1949_v12 = vadd.f32 %v1948_v3, %v1947_v6  ;;  %v2104_v6 = vld [vmem:[#allocation2 + $0x90] sm:$0xff] }
 0x4db   :  { %v1941_v7 = vsel %vm48_vm0, %v1769_v2, 0.0 }
 0x4dc   :  { %v4845_v4 = vpop.f32.mrf.mxu0  ;;  %v1942_v47 = vadd.f32 %v1941_v7, %v1940_v14  ;;  %v2103_v7 = vld [vmem:[#allocation2 + $0x88] sm:$0xff] }
 0x4dd   :  { %v1950_v11 = vsel %vm48_vm0, %v4845_v4, 0.0  ;;  %v2105_v4 = vld [vmem:[#allocation2 + $0x98] sm:$0xff] }
 0x4de   :  { %v1850_v13 = vpop.f32.mrf.mxu0  ;;  %v1951_v16 = vadd.f32 %v1950_v11, %v1949_v12  ;;  %4862 = vmatprep.subr.mxu1 %v2105_v4  ;;  %v2102_v11 = vld [vmem:[#allocation2 + $0x80] sm:$0xff]  ;;  %v2008_v12 = vsub.s32 4, %v5242_v15 }
 0x4df   :  { %v1943_v45 = vsel %vm48_vm0, %v1850_v13, 0.0  ;;  %4863 = vmatpush3.msra.mxu1 %v2105_v4  ;;  %v39_v4 = vld [vmem:[%s5691_s3 + $0x8] sm:$0x3] }
 0x4e0   :  { %v4850_v20 = vpop.f32.mrf.mxu1  ;;  %v1944_v23 = vadd.f32 %v1943_v45, %v1942_v47  ;;  %4864 = vmatprep.subr.mxu1 %v2104_v6  ;;  %v2009_v13 = vrot.slane %v5256_v19, %v2008_v12 }
 0x4e1   :  { %v1952_v22 = vsel %vm48_vm0, %v4850_v20, 0.0  ;;  %4865 = vmatpush3.msra.mxu1 %v2104_v6 }
 0x4e2   :  { %v1953_v24 = vadd.f32 %v1952_v22, %v1951_v16  ;;  %v1931_v25 = vpop.f32.mrf.mxu1  ;;  %4866 = vmatprep.subr.mxu1 %v2103_v7 }
 0x4e3   :  { %v1945_v26 = vsel %vm48_vm0, %v1931_v25, 0.0  ;;  %4867 = vmatpush3.msra.mxu1 %v2103_v7  ;;  %v2222_v7 = vrot.slane %v39_v4, %v5245_v17 }
 0x4e4   :  { %v1959_v27 = vadd.f32 %v1957_v21, %v1953_v24  ;;  %v1946_v28 = vadd.f32 %v1945_v26, %v1944_v23  ;;  %4868 = vmatprep.subr.mxu1 %v2102_v11 }
 0x4e5   :  { %4869 = vmatpush3.msra.mxu1 %v2102_v11 }
 0x4e6   :  { %v1958_v29 = vadd.f32 %v1957_v21, %v1946_v28  ;;  %v1961_v30 = vadd.f32 %v1959_v27, %v5227_v9 }
 0x4e8   :  { %v1965_v31 = vsel %vm48_vm0, %v1961_v30, 0.0  ;;  %v1960_v32 = vadd.f32 %v1958_v29, %v5222_v8  ;;  %v2004_v8 = vld [vmem:[#allocation2 + $0x70] sm:$0xff] }
 0x4e9   :  { %1966 = vadd.xlane.f32.xlu1 %v1965_v31  ;;  %4853 = vmatprep.subr.mxu0 %v2004_v8 }
 0x4ea   :  { %v1962_v33 = vsel %vm48_vm0, %v1960_v32, 0.0  ;;  %4854 = vmatpush3.msra.mxu0 %v2004_v8 }
 0x4eb   :  { %1963 = vadd.xlane.f32.xlu0 %v1962_v33  ;;  %4855 = vmatprep.subr.mxu0 %v2003_v46 }
 0x4ec   :  { %4856 = vmatpush3.msra.mxu0 %v2003_v46 }
 0x4ed   :  { %4857 = vmatprep.subr.mxu0 %v2002_v49 }
 0x4ee   :  { %4858 = vmatpush3.msra.mxu0 %v2002_v49 }
 0x572   :  { %v1967_v34 = vpop.xlane.xlu1 %1966 }
 0x573   :  { %v1970_v35 = vmul.f32 0.03125, %v1967_v34 }
 0x574   :  { %v1964_v36 = vpop.xlane.xlu0 %1963 }
 0x575   :  { %v1969_v37 = vmul.f32 0.03125, %v1964_v36  ;;  %v1972_v38 = vsub.f32 %v1961_v30, %v1970_v35  ;;  %v2108_v30 = vsub.s32 5, %v5242_v15 }
 0x577   :  { %v1971_v39 = vsub.f32 %v1960_v32, %v1969_v37  ;;  %v1974_v43 = vmul.f32 %v1972_v38, %v1972_v38  ;;  %v2109_v31 = vrot.slane %v5256_v19, %v2108_v30 }
 0x579   :  { %v1973_v40 = vmul.f32 %v1971_v39, %v1971_v39  ;;  %v1978_v9 = vsel %vm48_vm0, %v1974_v43, 0.0 }
 0x57b   :  { %v1975_v41 = vsel %vm48_vm0, %v1973_v40, 0.0 }
 0x57c   :  { %1976 = vadd.xlane.f32.xlu0 %v1975_v41 }
 0x580   :  { %1979 = vadd.xlane.f32.xlu0 %v1978_v9 }
 0x605   :  { %v1977_v50 = vpop.xlane.xlu0 %1976 }
 0x606   :  { %v1981_v51 = vmul.f32 0.03125, %v1977_v50 }
 0x608   :  { %v1983_v52 = vadd.f32 1e-05, %v1981_v51  ;;  %v2238_v51 = vld [vmem:[#allocation2 + $0xd8] sm:$0xff] }
 0x609   :  { %v1980_v53 = vpop.xlane.xlu0 %1979  ;;  %4873 = vmatprep.subr.mxu0 %v2238_v51 }
 0x60a   :  { %5069 = vrsqrt.f32 %v1983_v52  ;;  %v1982_v54 = vmul.f32 0.03125, %v1980_v53  ;;  %v2328_v52 = vld [vmem:[#allocation2 + $0xf8] sm:$0xff]  ;;  %v2237_v53 = vld [vmem:[#allocation2 + $0xd0] sm:$0xff] }
 0x60b   :  { %4884 = vmatprep.subr.mxu1 %v2328_v52 }
 0x60c   :  { %v1984_v55 = vadd.f32 1e-05, %v1982_v54  ;;  %v2327_v54 = vld [vmem:[#allocation2 + $0xf0] sm:$0xff] }
 0x60e   :  { %5071 = vrsqrt.f32 %v1984_v55  ;;  %v2236_v55 = vld [vmem:[#allocation2 + $0xc8] sm:$0xff] }
 0x617   :  { %v5070_v59 = vpop.eup %5069 }
 0x618   :  { %v1987_v60 = vmul.f32 %v5070_v59, %v1971_v39  ;;  %v2235_v59 = vld [vmem:[#allocation2 + $0xc0] sm:$0xff] }
 0x61a   :  { %v1993_v62 = vmul.f32 %v1992_v58, %v1987_v60  ;;  %v2325_v60 = vld [vmem:[#allocation2 + $0xe0] sm:$0xff] }
 0x61b   :  { %v5072_v63 = vpop.eup %5071 }
 0x61c   :  { %v1988_v0 = vmul.f32 %v5072_v63, %v1972_v38  ;;  %v1999_v1 = vadd.f32 %v1998_v61, %v1993_v62 }
 0x61e   :  { %v1994_v2 = vmul.f32 %v1992_v58, %v1988_v0  ;;  %4859 = vmatprep.mubr.msk.f32.mxu0 %vm48_vm0, %v1999_v1  ;;  %v2326_v58 = vld [vmem:[#allocation2 + $0xe8] sm:$0xff] }
 0x620   :  { %v2000_v3 = vadd.f32 %v1998_v61, %v1994_v2  ;;  %v2412_v61 = vld [vmem:[#allocation2 + $0x118] sm:$0xff] }
 0x622   :  { %4860 = vmatmul.mubr.msk.f32.vlgmr.msra.gmra.mxu0 %vm48_vm0, %v2000_v3 }
 0x623   :  { %4874 = vmatpush3.msra.mxu0 %v2238_v51 }
 0x624   :  { %4875 = vmatprep.subr.mxu0 %v2237_v53 }
 0x625   :  { %4876 = vmatpush3.msra.mxu0 %v2237_v53 }
 0x626   :  { %4877 = vmatprep.subr.mxu0 %v2236_v55 }
 0x627   :  { %4878 = vmatpush3.msra.mxu0 %v2236_v55 }
 0x628   :  { %4879 = vmatprep.subr.mxu0 %v2235_v59 }
 0x629   :  { %4880 = vmatpush3.msra.mxu0 %v2235_v59 }
 0x62a   :  { %4895 = vmatprep.subr.mxu0 %v2412_v61 }
 0x6e2   :  { %v4861_v14 = vpop.f32.mrf.mxu0 }
 0x6e3   :  { %v2088_v45 = vadd.f32 %v4861_v14, %v2009_v13 }
 0x6e4   :  { %v2082_v47 = vpop.f32.mrf.mxu0 }
 0x6e5   :  { %v2094_v16 = vmul.f32 0.70710677, %v2088_v45  ;;  %v2083_v20 = vadd.f32 %v2082_v47, %v2009_v13  ;;  %v2092_v27 = vmul.f32 0.5, %v2088_v45  ;;  %v2228_v47 = vrot.slane %v39_v4, %v5248_v18 }
 0x6e7   :  { %5073 = verf.f32 %v2094_v16  ;;  %v2093_v21 = vmul.f32 0.70710677, %v2083_v20  ;;  %v2091_v25 = vmul.f32 0.5, %v2083_v20 }
 0x6e9   :  { %5075 = verf.f32 %v2093_v21 }
 0x6f4   :  { %v5074_v22 = vpop.eup %5073 }
 0x6f5   :  { %v2098_v24 = vadd.f32 1.0, %v5074_v22  ;;  %v2411_v22 = vld [vmem:[#allocation2 + $0x110] sm:$0xff] }
 0x6f6   :  { %v5076_v23 = vpop.eup %5075 }
 0x6f7   :  { %v2097_v26 = vadd.f32 1.0, %v5076_v23  ;;  %v2100_v29 = vmul.f32 %v2098_v24, %v2092_v27  ;;  %v2410_v23 = vld [vmem:[#allocation2 + $0x108] sm:$0xff]  ;;  %v2409_v24 = vld [vmem:[#allocation2 + $0x100] sm:$0xff] }
 0x6f9   :  { %v2099_v28 = vmul.f32 %v2097_v26, %v2091_v25  ;;  %v5481_v25 = vld [vmem:[%s5691_s3 + $0x10] sm:$0xff] }
 0x6fa   :  { %v2242_v26 = vrot.slane %v5481_v25, %v5245_v17  ;;  %v2332_v27 = vrot.slane %v5481_v25, %v5248_v18 }
 0x6fb   :  { %4870 = vmatprep.mubr.msk.f32.mxu1 %vm48_vm0, %v2099_v28 }
 0x6fc   :  { %4871 = vmatmul.mubr.msk.f32.vlgmr.msra.gmra.mxu1 %vm48_vm0, %v2100_v29 }
 0x6fd   :  { %4885 = vmatpush3.msra.mxu1 %v2328_v52 }
 0x6fe   :  { %4886 = vmatprep.subr.mxu1 %v2327_v54 }
 0x6ff   :  { %4887 = vmatpush3.msra.mxu1 %v2327_v54 }
 0x700   :  { %4888 = vmatprep.subr.mxu1 %v2326_v58 }
 0x701   :  { %4889 = vmatpush3.msra.mxu1 %v2326_v58 }
 0x702   :  { %4890 = vmatprep.subr.mxu1 %v2325_v60 }
 0x703   :  { %4891 = vmatpush3.msra.mxu1 %v2325_v60 }
 0x704   :  { %4906 = vmatprep.subr.mxu1 %v5177_v10 }
 0x7bc   :  { %v4872_v32 = vpop.f32.mrf.mxu1 }
 0x7bd   :  { %v2188_v33 = vadd.f32 %v4872_v32, %v2109_v31 }
 0x7be   :  { %v2182_v34 = vpop.f32.mrf.mxu1 }
 0x7bf   :  { %v2183_v35 = vadd.f32 %v2182_v34, %v2109_v31  ;;  %v2192_v36 = vadd.f32 %v2188_v33, %v2000_v3 }
 0x7c1   :  { %v2196_v37 = vsel %vm48_vm0, %v2192_v36, 0.0  ;;  %v2191_v38 = vadd.f32 %v2183_v35, %v1999_v1 }
 0x7c2   :  { %2197 = vadd.xlane.f32.xlu0 %v2196_v37 }
 0x7c3   :  { %v2193_v39 = vsel %vm48_vm0, %v2191_v38, 0.0 }
 0x7c4   :  { %2194 = vadd.xlane.f32.xlu1 %v2193_v39 }
 0x84b   :  { %v2198_v40 = vpop.xlane.xlu0 %2197 }
 0x84c   :  { %v2200_v41 = vmul.f32 0.03125, %v2198_v40 }
 0x84d   :  { %v2195_v43 = vpop.xlane.xlu1 %2194 }
 0x84e   :  { %v2202_v9 = vsub.f32 %v2192_v36, %v2200_v41  ;;  %v2199_v44 = vmul.f32 0.03125, %v2195_v43 }
 0x850   :  { %v2201_v8 = vsub.f32 %v2191_v38, %v2199_v44  ;;  %v2204_v46 = vmul.f32 %v2202_v9, %v2202_v9 }
 0x852   :  { %v2208_v19 = vsel %vm48_vm0, %v2204_v46, 0.0  ;;  %v2203_v49 = vmul.f32 %v2201_v8, %v2201_v8 }
 0x853   :  { %2209 = vadd.xlane.f32.xlu0 %v2208_v19 }
 0x854   :  { %v2205_v50 = vsel %vm48_vm0, %v2203_v49, 0.0  ;;  %v2416_v49 = vrot.slane %v5481_v25, %v221_v42 }
 0x855   :  { %2206 = vadd.xlane.f32.xlu1 %v2205_v50 }
 0x8dc   :  { %v2210_v62 = vpop.xlane.xlu0 %2209 }
 0x8dd   :  { %v2212_v63 = vmul.f32 0.03125, %v2210_v62 }
 0x8de   :  { %v2207_v0 = vpop.xlane.xlu1 %2206 }
 0x8df   :  { %v2214_v1 = vadd.f32 1e-05, %v2212_v63  ;;  %v2211_v2 = vmul.f32 0.03125, %v2207_v0 }
 0x8e1   :  { %5077 = vrsqrt.f32 %v2214_v1  ;;  %v2213_v3 = vadd.f32 1e-05, %v2211_v2 }
 0x8e3   :  { %5079 = vrsqrt.f32 %v2213_v3 }
 0x8ee   :  { %v5078_v6 = vpop.eup %5077 }
 0x8ef   :  { %v2218_v11 = vmul.f32 %v5078_v6, %v2202_v9 }
 0x8f0   :  { %v5080_v13 = vpop.eup %5079 }
 0x8f1   :  { %v2217_v14 = vmul.f32 %v5080_v13, %v2201_v8  ;;  %v2224_v45 = vmul.f32 %v2222_v7, %v2218_v11 }
 0x8f3   :  { %v2223_v16 = vmul.f32 %v2222_v7, %v2217_v14  ;;  %v5459_v21 = vadd.f32 %v2228_v47, %v2224_v45 }
 0x8f5   :  { %v5457_v20 = vadd.f32 %v2228_v47, %v2223_v16 }
 0x8f7   :  { %4881 = vmatprep.mubr.msk.f32.mxu0 %vm48_vm0, %v5457_v20  ;;  %4892 = vmatprep.mubr.msk.f32.mxu1 %vm48_vm0, %v5457_v20 }
 0x8f8   :  { %4882 = vmatmul.mubr.msk.f32.vlgmr.msra.gmra.mxu0 %vm48_vm0, %v5459_v21  ;;  %4893 = vmatmul.mubr.msk.f32.vlgmr.msra.gmra.mxu1 %vm48_vm0, %v5459_v21 }
 0x8f9   :  { %4896 = vmatpush3.msra.mxu0 %v2412_v61  ;;  %4903 = vmatprep.mubr.msk.f32.mxu0 %vm48_vm0, %v5457_v20 }
 0x8fa   :  { %4897 = vmatprep.subr.mxu0 %v2411_v22  ;;  %4908 = vmatprep.mubr.msk.f32.mxu1 %vm5178_vm1, %v5177_v10 }
 0x8fb   :  { %4898 = vmatpush3.msra.mxu0 %v2411_v22 }
 0x8fc   :  { %4899 = vmatprep.subr.mxu0 %v2410_v23 }
 0x8fd   :  { %4900 = vmatpush3.msra.mxu0 %v2410_v23 }
 0x8fe   :  { %4901 = vmatprep.subr.mxu0 %v2409_v24 }
 0x8ff   :  { %4902 = vmatpush3.msra.mxu0 %v2409_v24 }
 0x900   :  { %4904 = vmatmul.mubr.msk.f32.vlgmr.msra.gmra.mxu0 %vm48_vm0, %v5459_v21  ;;  %4916 = vmatprep.subr.mxu0 %v5177_v10 }
 0x901   :  { %4918 = vmatprep.mubr.msk.f32.mxu0 %vm5178_vm1, %v5177_v10 }
 0x9b8   :  { %v4883_v28 = vpop.f32.mrf.mxu0  ;;  %v4894_v29 = vpop.f32.mrf.mxu1 }
 0x9b9   :  { %v2321_v31 = vadd.f32 %v4883_v28, %v2242_v26  ;;  %v2405_v32 = vadd.f32 %v4894_v29, %v2332_v27 }
 0x9ba   :  { %v2399_v33 = vpop.f32.mrf.mxu1  ;;  %v2315_v34 = vpop.f32.mrf.mxu0 }
 0x9bb   :  { %v2400_v35 = vadd.f32 %v2399_v33, %v2332_v27  ;;  %2510 = vrot.lane.b32.xlu0 %v2405_v32, %s5179_s29  ;;  %2496 = vrot.lane.b32.xlu1 %v2321_v31, %s5179_s29  ;;  %v2316_v36 = vadd.f32 %v2315_v34, %v2242_v26 }
 0x9bd   :  { %4907 = vmatpush3.xpose.msk.msra.mxu1 %vm346_vm2, %v2400_v35 }
 0x9be   :  { %4911 = vmatprep.subr.mxu1 %v5177_v10 }
 0x9bf   :  { %2512 = vrot.lane.b32.xlu0 %v2400_v35, %s5180_s30  ;;  %2514 = vrot.lane.b32.xlu1 %v2405_v32, %s5180_s30 }
 0x9c0   :  { %4909 = vmatmul.mubr.msk.f32.vlgmr.msra.gmra.mxu1 %vm346_vm2, %v2316_v36  ;;  %v4905_v44 = vpop.f32.mrf.mxu0 }
 0x9c1   :  { %4912 = vmatpush3.xpose.msk.msra.mxu1 %vm346_vm2, %v2405_v32  ;;  %4913 = vmatprep.mubr.msk.f32.mxu1 %vm5178_vm1, %v5177_v10  ;;  %v5543_v42 = vadd.f32 %v4905_v44, %v2416_v49 }
 0x9c2   :  { %4921 = vmatprep.subr.mxu1 %v5177_v10  ;;  %v2483_v19 = vpop.f32.mrf.mxu0 }
 0x9c3   :  { %2508 = vrot.lane.b32.xlu1 %v2400_v35, %s5179_s29  ;;  %2498 = vrot.lane.b32.xlu0 %v2316_v36, %s5180_s30  ;;  %v5534_v50 = vadd.f32 %v2483_v19, %v2416_v49 }
 0x9c4   :  { %4914 = vmatmul.mubr.msk.f32.vlgmr.msra.gmra.mxu1 %vm346_vm2, %v2321_v31 }
 0x9c5   :  { %4923 = vmatprep.mubr.msk.f32.mxu1 %vm5178_vm1, %v5177_v10 }
 0x9c7   :  { %2516 = vrot.lane.b32.xlu0 %v2400_v35, %s5181_s6  ;;  %2494 = vrot.lane.b32.xlu1 %v2316_v36, %s5179_s29 }
 0x9cb   :  { %2502 = vrot.lane.b32.xlu0 %v2316_v36, %s5181_s6  ;;  %2500 = vrot.lane.b32.xlu1 %v2321_v31, %s5180_s30 }
 0x9cf   :  { %2518 = vrot.lane.b32.xlu1 %v2405_v32, %s5181_s6  ;;  %v5129_v32 = vld [vmem:[%s5689_s1] sm:$0xff] }
 0x9d3   :  { %2504 = vrot.lane.b32.xlu1 %v2321_v31, %s5181_s6 }
 0xa2d   :  { %v2511_v37 = vpop.permute.xlu0 %2510  ;;  %v2497_v38 = vpop.permute.xlu1 %2496 }
 0xa2e   :  { %4922 = vmatpush3.xpose.msk.msra.mxu1 %vm346_vm2, %v2511_v37 }
 0xa2f   :  { %4931 = vmatprep.subr.mxu1 %v5177_v10 }
 0xa31   :  { %v2513_v39 = vpop.permute.xlu0 %2512  ;;  %v2515_v40 = vpop.permute.xlu1 %2514  ;;  %4924 = vmatmul.mubr.msk.f32.vlgmr.msra.gmra.mxu1 %vm346_vm2, %v2497_v38 }
 0xa32   :  { %4932 = vmatpush3.xpose.msk.msra.mxu1 %vm346_vm2, %v2515_v40  ;;  %4933 = vmatprep.mubr.msk.f32.mxu1 %vm5178_vm1, %v5177_v10 }
 0xa33   :  { %4941 = vmatprep.subr.mxu1 %v5177_v10 }
 0xa35   :  { %v2509_v41 = vpop.permute.xlu1 %2508  ;;  %v2499_v43 = vpop.permute.xlu0 %2498 }
 0xa36   :  { %4917 = vmatpush3.xpose.msk.msra.mxu0 %vm346_vm2, %v2509_v41 }
 0xa37   :  { %4926 = vmatprep.subr.mxu0 %v5177_v10 }
 0xa39   :  { %v2495_v9 = vpop.permute.xlu1 %2494  ;;  %v2517_v8 = vpop.permute.xlu0 %2516 }
 0xa3a   :  { %4919 = vmatmul.mubr.msk.f32.vlgmr.msra.gmra.mxu0 %vm346_vm2, %v2495_v9 }
 0xa3b   :  { %4927 = vmatpush3.xpose.msk.msra.mxu0 %vm346_vm2, %v2513_v39  ;;  %4928 = vmatprep.mubr.msk.f32.mxu0 %vm5178_vm1, %v5177_v10 }
 0xa3c   :  { %4936 = vmatprep.subr.mxu0 %v5177_v10 }
 0xa3d   :  { %v2501_v46 = vpop.permute.xlu1 %2500  ;;  %v2503_v51 = vpop.permute.xlu0 %2502 }
 0xa3e   :  { %4929 = vmatmul.mubr.msk.f32.vlgmr.msra.gmra.mxu0 %vm346_vm2, %v2499_v43  ;;  %4934 = vmatmul.mubr.msk.f32.vlgmr.msra.gmra.mxu1 %vm346_vm2, %v2501_v46 }
 0xa3f   :  { %4937 = vmatpush3.xpose.msk.msra.mxu0 %vm346_vm2, %v2517_v8  ;;  %4938 = vmatprep.mubr.msk.f32.mxu0 %vm5178_vm1, %v5177_v10 }
 0xa40   :  { %4946 = vmatprep.subr.mxu0 %v5177_v10  ;;  %4943 = vmatprep.mubr.msk.f32.mxu1 %vm5178_vm1, %v5177_v10 }
 0xa41   :  { %v2519_v52 = vpop.permute.xlu1 %2518 }
 0xa42   :  { %4939 = vmatmul.mubr.msk.f32.vlgmr.msra.gmra.mxu0 %vm346_vm2, %v2503_v51  ;;  %4942 = vmatpush3.xpose.msk.msra.mxu1 %vm346_vm2, %v2519_v52 }
 0xa43   :  { %4947 = vmatpush3.msra.mxu0 %v5534_v50  ;;  %4951 = vmatprep.subr.mxu1 %v5177_v10 }
 0xa44   :  { %4948 = vmatprep.mubr.msk.f32.mxu0 %vm5178_vm1, %v5177_v10  ;;  %4956 = vmatprep.subr.mxu0 %v5177_v10 }
 0xa45   :  { %v2505_v53 = vpop.permute.xlu1 %2504 }
 0xa46   :  { %4944 = vmatmul.mubr.msk.f32.vlgmr.msra.gmra.mxu1 %vm346_vm2, %v2505_v53 }
 0xa47   :  { %4952 = vmatpush3.msra.mxu1 %v5543_v42  ;;  %4953 = vmatprep.mubr.msk.f32.mxu1 %vm5178_vm1, %v5177_v10 }
 0xa48   :  { %4961 = vmatprep.subr.mxu1 %v5177_v10 }
 0xa80   :  { %v2610_v54 = vpop.f32.mrf.mxu1 }
 0xa81   :  { %v2611_v55 = vadd.f32 %v2610_v54, %v5331_v48 }
 0xa82   :  { %v4910_v58 = vpop.f32.mrf.mxu1 }
 0xa83   :  { %v3132_v59 = vsel %vm346_vm2, %v2611_v55, -inf }
 0xa84   :  { %3133 = vmax.xlane.f32.xlu0 %v3132_v59  ;;  %v2684_v60 = vpop.f32.mrf.mxu1 }
 0xa85   :  { %v2685_v61 = vadd.f32 %v2684_v60, %v5331_v48 }
 0xa86   :  { %v4915_v62 = vpop.f32.mrf.mxu1 }
 0xa87   :  { %v3135_v63 = vsel %vm346_vm2, %v2685_v61, -inf }
 0xa88   :  { %3136 = vmax.xlane.f32.xlu1 %v3135_v63 }
 0xaf1   :  { %v2832_v0 = vpop.f32.mrf.mxu1 }
 0xaf2   :  { %v2833_v6 = vadd.f32 %v2832_v0, %v5331_v48 }
 0xaf3   :  { %v4925_v1 = vpop.f32.mrf.mxu1 }
 0xaf4   :  { %v3141_v23 = vsel %vm346_vm2, %v2833_v6, -inf }
 0xafa   :  { %v2758_v2 = vpop.f32.mrf.mxu0 }
 0xafb   :  { %v2759_v3 = vadd.f32 %v2758_v2, %v5331_v48 }
 0xafc   :  { %v4920_v4 = vpop.f32.mrf.mxu0 }
 0xafd   :  { %v3138_v7 = vsel %vm346_vm2, %v2759_v3, -inf }
 0xafe   :  { %v2906_v11 = vpop.f32.mrf.mxu0  ;;  %3139 = vmax.xlane.f32.xlu0 %v3138_v7  ;;  %v2980_v13 = vpop.f32.mrf.mxu1 }
 0xaff   :  { %v2907_v14 = vadd.f32 %v2906_v11, %v5331_v48  ;;  %v2981_v16 = vadd.f32 %v2980_v13, %v5331_v48 }
 0xb00   :  { %v4930_v45 = vpop.f32.mrf.mxu0  ;;  %v4935_v47 = vpop.f32.mrf.mxu1 }
 0xb01   :  { %v3144_v22 = vsel %vm346_vm2, %v2907_v14, -inf  ;;  %v3147_v29 = vsel %vm346_vm2, %v2981_v16, -inf }
 0xb02   :  { %v3054_v24 = vpop.f32.mrf.mxu0  ;;  %3145 = vmax.xlane.f32.xlu1 %v3144_v22  ;;  %3142 = vmax.xlane.f32.xlu0 %v3141_v23 }
 0xb03   :  { %v3055_v26 = vadd.f32 %v3054_v24, %v5331_v48 }
 0xb04   :  { %v4940_v27 = vpop.f32.mrf.mxu0 }
 0xb05   :  { %v3150_v28 = vsel %vm346_vm2, %v3055_v26, -inf }
 0xb06   :  { %3151 = vmax.xlane.f32.xlu1 %v3150_v28  ;;  %3148 = vmax.xlane.f32.xlu0 %v3147_v29  ;;  %v3128_v31 = vpop.f32.mrf.mxu1 }
 0xb07   :  { %v3129_v33 = vadd.f32 %v5129_v32, %v3128_v31 }
 0xb08   :  { %v4945_v34 = vpop.f32.mrf.mxu1 }
 0xb09   :  { %v3153_v35 = vsel %vm346_vm2, %v3129_v33, -inf }
 0xb0a   :  { %3154 = vmax.xlane.f32.xlu0 %v3153_v35 }
 0xb0d   :  { %v3134_v37 = vpop.xlane.xlu0 %3133 }
 0xb0e   :  { %v3156_v38 = vsub.f32 %v2611_v55, %v3134_v37 }
 0xb10   :  { %v3164_v40 = vmul.f32 1.442695, %v3156_v38 }
 0xb11   :  { %v3137_v48 = vpop.xlane.xlu1 %3136 }
 0xb12   :  { %v3157_v36 = vsub.f32 %v2685_v61, %v3137_v48 }
 0xb14   :  { %v3166_v39 = vmul.f32 1.442695, %v3157_v36 }
 0xb16   :  { %5081 = vpow2.f32 %v3166_v39 }
 0xb17   :  { %2522 = vrot.lane.b32.xlu1 %v5534_v50, %s5179_s29  ;;  %5083 = vpow2.f32 %v3164_v40 }
 0xb1b   :  { %2528 = vrot.lane.b32.xlu1 %v5534_v50, %s5180_s30 }
 0xb1f   :  { %2530 = vrot.lane.b32.xlu1 %v5543_v42, %s5180_s30 }
 0xb20   :  { %2524 = vrot.lane.b32.xlu0 %v5543_v42, %s5179_s29 }
 0xb23   :  { %v5082_v41 = vpop.eup %5081 }
 0xb24   :  { %v3183_v43 = vsel %vm346_vm2, %v5082_v41, 0.0  ;;  %v5084_v9 = vpop.eup %5083 }
 0xb25   :  { %v3180_v44 = vsel %vm346_vm2, %v5084_v9, 0.0 }
 0xb3f   :  { %3184 = vadd.xlane.f32.xlu0 %v3183_v43 }
 0xb43   :  { %3181 = vadd.xlane.f32.xlu1 %v3180_v44 }
 0xb87   :  { %v3140_v8 = vpop.xlane.xlu0 %3139 }
 0xb88   :  { %v3158_v46 = vsub.f32 %v2759_v3, %v3140_v8 }
 0xb8a   :  { %v3168_v19 = vmul.f32 1.442695, %v3158_v46 }
 0xb8b   :  { %v3146_v49 = vpop.xlane.xlu1 %3145  ;;  %v3143_v51 = vpop.xlane.xlu0 %3142 }
 0xb8c   :  { %5085 = vpow2.f32 %v3168_v19  ;;  %v3160_v52 = vsub.f32 %v2907_v14, %v3146_v49  ;;  %v3159_v53 = vsub.f32 %v2833_v6, %v3143_v51  ;;  %v3805_v19 = vld [vmem:[#allocation2 + $0x160] sm:$0xff] }
 0xb8e   :  { %v3172_v54 = vmul.f32 1.442695, %v3160_v52  ;;  %v3170_v55 = vmul.f32 1.442695, %v3159_v53 }
 0xb8f   :  { %v3152_v58 = vpop.xlane.xlu1 %3151  ;;  %v3149_v59 = vpop.xlane.xlu0 %3148 }
 0xb90   :  { %5087 = vpow2.f32 %v3172_v54  ;;  %v3162_v60 = vsub.f32 %v3055_v26, %v3152_v58  ;;  %v3161_v61 = vsub.f32 %v2981_v16, %v3149_v59  ;;  %v3806_v58 = vld [vmem:[#allocation2 + $0x168] sm:$0xff]  ;;  %v3807_v59 = vld [vmem:[#allocation2 + $0x170] sm:$0xff] }
 0xb91   :  { %5089 = vpow2.f32 %v3170_v55 }
 0xb92   :  { %v3176_v62 = vmul.f32 1.442695, %v3162_v60  ;;  %v3174_v63 = vmul.f32 1.442695, %v3161_v61  ;;  %v3808_v60 = vld [vmem:[#allocation2 + $0x178] sm:$0xff] }
 0xb93   :  { %v3155_v0 = vpop.xlane.xlu0 %3154  ;;  %v2523_v24 = vpop.permute.xlu1 %2522 }
 0xb94   :  { %5091 = vpow2.f32 %v3176_v62  ;;  %v3163_v1 = vsub.f32 %v3129_v33, %v3155_v0 }
 0xb95   :  { %5093 = vpow2.f32 %v3174_v63 }
 0xb96   :  { %v3178_v2 = vmul.f32 1.442695, %v3163_v1 }
 0xb97   :  { %v2529_v26 = vpop.permute.xlu1 %2528  ;;  %v2525_v27 = vpop.permute.xlu0 %2524 }
 0xb98   :  { %5095 = vpow2.f32 %v3178_v2 }
 0xb99   :  { %v5086_v3 = vpop.eup %5085 }
 0xb9a   :  { %v3186_v4 = vsel %vm346_vm2, %v5086_v3, 0.0 }
 0xb9b   :  { %3187 = vadd.xlane.f32.xlu1 %v3186_v4  ;;  %v2531_v28 = vpop.permute.xlu1 %2530 }
 0xb9d   :  { %v5088_v6 = vpop.eup %5087 }
 0xb9e   :  { %v5090_v7 = vpop.eup %5089  ;;  %v3192_v11 = vsel %vm346_vm2, %v5088_v6, 0.0 }
 0xb9f   :  { %3193 = vadd.xlane.f32.xlu1 %v3192_v11  ;;  %v3189_v13 = vsel %vm346_vm2, %v5090_v7, 0.0 }
 0xba0   :  { %3190 = vadd.xlane.f32.xlu0 %v3189_v13 }
 0xba1   :  { %v5092_v14 = vpop.eup %5091 }
 0xba2   :  { %v5581_v45 = vpop.eup %5093  ;;  %v3198_v47 = vsel %vm346_vm2, %v5092_v14, 0.0 }
 0xba3   :  { %3199 = vadd.xlane.f32.xlu1 %v3198_v47  ;;  %v3195_v16 = vsel %vm346_vm2, %v5581_v45, 0.0 }
 0xba4   :  { %3196 = vadd.xlane.f32.xlu0 %v3195_v16 }
 0xba5   :  { %v5586_v22 = vpop.eup %5095 }
 0xba6   :  { %v3201_v23 = vsel %vm346_vm2, %v5586_v22, 0.0 }
 0xba8   :  { %3202 = vadd.xlane.f32.xlu0 %v3201_v23 }
 0xbb4   :  { %2536 = vrot.lane.b32.xlu1 %v5543_v42, %s5181_s6 }
 0xbbe   :  { %2534 = vrot.lane.b32.xlu0 %v5534_v50, %s5181_s6 }
 0xbc8   :  { %v3185_v29 = vpop.xlane.xlu0 %3184 }
 0xbc9   :  { %5097 = vrcp.f32 %v3185_v29 }
 0xbcc   :  { %v3182_v31 = vpop.xlane.xlu1 %3181 }
 0xbcd   :  { %5099 = vrcp.f32 %v3182_v31 }
 0xbd6   :  { %v5098_v32 = vpop.eup %5097 }
 0xbd7   :  { %v3213_v33 = vmul.f32 %v5098_v32, %v5082_v41 }
 0xbd9   :  { %4954 = vmatmul.mubr.msk.f32.vlgmr.msra.gmra.mxu1 %vm346_vm2, %v3213_v33 }
 0xbda   :  { %v5100_v34 = vpop.eup %5099  ;;  %4962 = vmatpush3.msra.mxu1 %v2525_v27  ;;  %4963 = vmatprep.mubr.msk.f32.mxu1 %vm5178_vm1, %v5177_v10 }
 0xbdb   :  { %v3212_v42 = vmul.f32 %v5100_v34, %v5084_v9  ;;  %4971 = vmatprep.subr.mxu1 %v5177_v10 }
 0xbdd   :  { %4949 = vmatmul.mubr.msk.f32.vlgmr.msra.gmra.mxu0 %vm346_vm2, %v3212_v42 }
 0xbde   :  { %4957 = vmatpush3.msra.mxu0 %v2523_v24  ;;  %4958 = vmatprep.mubr.msk.f32.mxu0 %vm5178_vm1, %v5177_v10 }
 0xbdf   :  { %4966 = vmatprep.subr.mxu0 %v5177_v10 }
 0xc24   :  { %v3188_v50 = vpop.xlane.xlu1 %3187 }
 0xc25   :  { %5101 = vrcp.f32 %v3188_v50 }
 0xc28   :  { %v3194_v35 = vpop.xlane.xlu1 %3193 }
 0xc29   :  { %5103 = vrcp.f32 %v3194_v35  ;;  %v3191_v48 = vpop.xlane.xlu0 %3190 }
 0xc2a   :  { %5105 = vrcp.f32 %v3191_v48 }
 0xc2c   :  { %v3200_v36 = vpop.xlane.xlu1 %3199 }
 0xc2d   :  { %5107 = vrcp.f32 %v3200_v36  ;;  %v3197_v37 = vpop.xlane.xlu0 %3196  ;;  %v4150_v36 = vrot.slane %v5481_v25, %v1956_v5 }
 0xc2e   :  { %5109 = vrcp.f32 %v3197_v37 }
 0xc30   :  { %v2537_v53 = vpop.permute.xlu1 %2536 }
 0xc31   :  { %v3203_v38 = vpop.xlane.xlu0 %3202 }
 0xc32   :  { %v5102_v39 = vpop.eup %5101  ;;  %5111 = vrcp.f32 %v3203_v38 }
 0xc33   :  { %v3214_v40 = vmul.f32 %v5102_v39, %v5086_v3 }
 0xc35   :  { %4959 = vmatmul.mubr.msk.f32.vlgmr.msra.gmra.mxu0 %vm346_vm2, %v3214_v40  ;;  %v2535_v8 = vpop.permute.xlu0 %2534 }
 0xc36   :  { %v5104_v41 = vpop.eup %5103  ;;  %4967 = vmatpush3.msra.mxu0 %v2529_v26  ;;  %4968 = vmatprep.mubr.msk.f32.mxu0 %vm5178_vm1, %v5177_v10 }
 0xc37   :  { %v5106_v43 = vpop.eup %5105  ;;  %4976 = vmatprep.subr.mxu0 %v5177_v10  ;;  %v3216_v9 = vmul.f32 %v5104_v41, %v5088_v6 }
 0xc38   :  { %v3215_v44 = vmul.f32 %v5106_v43, %v5090_v7 }
 0xc39   :  { %4969 = vmatmul.mubr.msk.f32.vlgmr.msra.gmra.mxu0 %vm346_vm2, %v3216_v9 }
 0xc3a   :  { %v5108_v46 = vpop.eup %5107  ;;  %4964 = vmatmul.mubr.msk.f32.vlgmr.msra.gmra.mxu1 %vm346_vm2, %v3215_v44  ;;  %4977 = vmatpush3.msra.mxu0 %v2535_v8 }
 0xc3b   :  { %v5110_v49 = vpop.eup %5109  ;;  %4972 = vmatpush3.msra.mxu1 %v2531_v28  ;;  %4973 = vmatprep.mubr.msk.f32.mxu1 %vm5178_vm1, %v5177_v10  ;;  %v3218_v51 = vmul.f32 %v5108_v46, %v5092_v14 }
 0xc3c   :  { %4978 = vmatprep.mubr.msk.f32.mxu0 %vm5178_vm1, %v5177_v10  ;;  %4981 = vmatprep.subr.mxu1 %v5177_v10  ;;  %v3217_v52 = vmul.f32 %v5110_v49, %v5581_v45 }
 0xc3d   :  { %4979 = vmatmul.mubr.msk.f32.vlgmr.msra.gmra.mxu0 %vm346_vm2, %v3218_v51  ;;  %4986 = vmatprep.subr.mxu0 %v3805_v19 }
 0xc3e   :  { %4974 = vmatmul.mubr.msk.f32.vlgmr.msra.gmra.mxu1 %vm346_vm2, %v3217_v52  ;;  %4987 = vmatpush3.msra.mxu0 %v3805_v19 }
 0xc3f   :  { %v5112_v54 = vpop.eup %5111  ;;  %4982 = vmatpush3.msra.mxu1 %v2537_v53  ;;  %4983 = vmatprep.mubr.msk.f32.mxu1 %vm5178_vm1, %v5177_v10 }
 0xc40   :  { %v3219_v55 = vmul.f32 %v5112_v54, %v5586_v22  ;;  %4991 = vmatprep.subr.mxu1 %v3806_v58  ;;  %4996 = vmatprep.subr.mxu0 %v3807_v59 }
 0xc42   :  { %4984 = vmatmul.mubr.msk.f32.vlgmr.msra.gmra.mxu1 %vm346_vm2, %v3219_v55 }
 0xc43   :  { %4992 = vmatpush3.msra.mxu1 %v3806_v58 }
 0xc44   :  { %5001 = vmatprep.subr.mxu1 %v3808_v60 }
 0xc99   :  { %v3362_v61 = vpop.f32.mrf.mxu1 }
 0xc9b   :  { %v4955_v62 = vpop.f32.mrf.mxu1 }
 0xc9c   :  { %v4195_v62 = vld [vmem:[#allocation2 + $0x128] sm:$0xff] }
 0xc9d   :  { %v3289_v63 = vpop.f32.mrf.mxu0 }
 0xc9e   :  { %4988 = vmatprep.mubr.msk.f32.mxu0 %vm346_vm2, %v3289_v63  ;;  %v4194_v63 = vld [vmem:[#allocation2 + $0x120] sm:$0xff] }
 0xc9f   :  { %v4950_v0 = vpop.f32.mrf.mxu0  ;;  %4989 = vmatmul.mubr.msk.f32.vlgmr.msra.gmra.mxu0 %vm346_vm2, %v3362_v61  ;;  %v4197_v61 = vld [vmem:[#allocation2 + $0x138] sm:$0xff] }
 0xca0   :  { %4997 = vmatpush3.msra.mxu0 %v3807_v59 }
 0xca1   :  { %5006 = vmatprep.subr.mxu0 %v4197_v61 }
 0xcf5   :  { %v3435_v10 = vpop.f32.mrf.mxu0 }
 0xcf6   :  { %4993 = vmatprep.mubr.msk.f32.mxu1 %vm346_vm2, %v3435_v10 }
 0xcf7   :  { %v4960_v1 = vpop.f32.mrf.mxu0 }
 0xcf9   :  { %v3581_v2 = vpop.f32.mrf.mxu0 }
 0xcfa   :  { %v3508_v3 = vpop.f32.mrf.mxu1  ;;  %4998 = vmatprep.mubr.msk.f32.mxu0 %vm346_vm2, %v3581_v2 }
 0xcfb   :  { %4994 = vmatmul.mubr.msk.f32.vlgmr.msra.gmra.mxu1 %vm346_vm2, %v3508_v3  ;;  %v4970_v4 = vpop.f32.mrf.mxu0 }
 0xcfc   :  { %v4965_v6 = vpop.f32.mrf.mxu1  ;;  %5002 = vmatpush3.msra.mxu1 %v3808_v60 }
 0xcfd   :  { %v3727_v7 = vpop.f32.mrf.mxu0  ;;  %v4184_v6 = vrot.slane %v5481_v25, %v1991_v56  ;;  %v4296_v56 = vld [vmem:[#allocation2 + $0x150] sm:$0xff] }
 0xcfe   :  { %v3654_v11 = vpop.f32.mrf.mxu1  ;;  %5003 = vmatprep.mubr.msk.f32.mxu1 %vm346_vm2, %v3727_v7 }
 0xcff   :  { %4999 = vmatmul.mubr.msk.f32.vlgmr.msra.gmra.mxu0 %vm346_vm2, %v3654_v11  ;;  %v4980_v13 = vpop.f32.mrf.mxu0 }
 0xd00   :  { %v4975_v14 = vpop.f32.mrf.mxu1  ;;  %5007 = vmatpush3.msra.mxu0 %v4197_v61  ;;  %v4190_v13 = vrot.slane %v5481_v25, %v1997_v57  ;;  %v4201_v57 = vrot.slane %v5481_v25, %v2008_v12  ;;  %v4301_v12 = vrot.slane %v5481_v25, %v2108_v30 }
 0xd02   :  { %v3800_v45 = vpop.f32.mrf.mxu1 }
 0xd03   :  { %5004 = vmatmul.mubr.msk.f32.vlgmr.msra.gmra.mxu1 %vm346_vm2, %v3800_v45 }
 0xd04   :  { %v4985_v47 = vpop.f32.mrf.mxu1 }
 0xd5f   :  { %v4990_v16 = vpop.f32.mrf.mxu0 }
 0xd60   :  { %v4140_v28 = vsel %vm48_vm0, %v4990_v16, 0.0 }
 0xd61   :  { %v3881_v23 = vpop.f32.mrf.mxu0 }
 0xd62   :  { %v4133_v34 = vsel %vm48_vm0, %v3881_v23, 0.0 }
 0xdbb   :  { %v4995_v22 = vpop.f32.mrf.mxu1 }
 0xdbc   :  { %v4141_v26 = vsel %vm48_vm0, %v4995_v22, 0.0 }
 0xdbd   :  { %v3962_v24 = vpop.f32.mrf.mxu1  ;;  %v4142_v32 = vadd.f32 %v4141_v26, %v4140_v28  ;;  %v4295_v26 = vld [vmem:[#allocation2 + $0x148] sm:$0xff] }
 0xdbe   :  { %v4134_v29 = vsel %vm48_vm0, %v3962_v24, 0.0  ;;  %v4297_v24 = vld [vmem:[#allocation2 + $0x158] sm:$0xff] }
 0xdbf   :  { %v5000_v27 = vpop.f32.mrf.mxu0  ;;  %v4135_v50 = vadd.f32 %v4134_v29, %v4133_v34  ;;  %5017 = vmatprep.subr.mxu1 %v4297_v24 }
 0xdc0   :  { %v4143_v31 = vsel %vm48_vm0, %v5000_v27, 0.0  ;;  %5018 = vmatpush3.msra.mxu1 %v4297_v24  ;;  %v4294_v27 = vld [vmem:[#allocation2 + $0x140] sm:$0xff] }
 0xdc1   :  { %v4043_v33 = vpop.f32.mrf.mxu0  ;;  %v4144_v35 = vadd.f32 %v4143_v31, %v4142_v32  ;;  %5019 = vmatprep.subr.mxu1 %v4296_v56 }
 0xdc2   :  { %v4136_v42 = vsel %vm48_vm0, %v4043_v33, 0.0  ;;  %5020 = vmatpush3.msra.mxu1 %v4296_v56 }
 0xdc3   :  { %v5005_v48 = vpop.f32.mrf.mxu1  ;;  %v4137_v38 = vadd.f32 %v4136_v42, %v4135_v50  ;;  %5021 = vmatprep.subr.mxu1 %v4295_v26 }
 0xdc4   :  { %v4145_v37 = vsel %vm48_vm0, %v5005_v48, 0.0  ;;  %5022 = vmatpush3.msra.mxu1 %v4295_v26 }
 0xdc5   :  { %v4146_v39 = vadd.f32 %v4145_v37, %v4144_v35  ;;  %v4124_v40 = vpop.f32.mrf.mxu1  ;;  %5023 = vmatprep.subr.mxu1 %v4294_v27 }
 0xdc6   :  { %v4138_v41 = vsel %vm48_vm0, %v4124_v40, 0.0  ;;  %5024 = vmatpush3.msra.mxu1 %v4294_v27 }
 0xdc7   :  { %v4152_v43 = vadd.f32 %v4150_v36, %v4146_v39  ;;  %v4139_v9 = vadd.f32 %v4138_v41, %v4137_v38 }
 0xdc9   :  { %v4151_v44 = vadd.f32 %v4150_v36, %v4139_v9  ;;  %v4154_v8 = vadd.f32 %v4152_v43, %v5459_v21 }
 0xdcb   :  { %v4158_v46 = vsel %vm48_vm0, %v4154_v8, 0.0  ;;  %v4153_v19 = vadd.f32 %v4151_v44, %v5457_v20  ;;  %v4196_v20 = vld [vmem:[#allocation2 + $0x130] sm:$0xff] }
 0xdcc   :  { %4159 = vadd.xlane.f32.xlu1 %v4158_v46  ;;  %5008 = vmatprep.subr.mxu0 %v4196_v20 }
 0xdcd   :  { %v4155_v49 = vsel %vm48_vm0, %v4153_v19, 0.0  ;;  %5009 = vmatpush3.msra.mxu0 %v4196_v20 }
 0xdce   :  { %4156 = vadd.xlane.f32.xlu0 %v4155_v49  ;;  %5010 = vmatprep.subr.mxu0 %v4195_v62 }
 0xdcf   :  { %5011 = vmatpush3.msra.mxu0 %v4195_v62  ;;  %v4525_v62 = vld [vmem:[%s5691_s3 + $0x18] sm:$0x3] }
 0xdd0   :  { %5012 = vmatprep.subr.mxu0 %v4194_v63 }
 0xdd1   :  { %5013 = vmatpush3.msra.mxu0 %v4194_v63  ;;  %v4414_v63 = vrot.slane %v4525_v62, %v5245_v17 }
 0xe55   :  { %v4160_v5 = vpop.xlane.xlu1 %4159 }
 0xe56   :  { %v4162_v51 = vmul.f32 0.03125, %v4160_v5 }
 0xe57   :  { %v4157_v52 = vpop.xlane.xlu0 %4156 }
 0xe58   :  { %v4161_v53 = vmul.f32 0.03125, %v4157_v52  ;;  %v4164_v54 = vsub.f32 %v4154_v8, %v4162_v51 }
 0xe5a   :  { %v4163_v55 = vsub.f32 %v4153_v19, %v4161_v53  ;;  %v4166_v60 = vmul.f32 %v4164_v54, %v4164_v54 }
 0xe5c   :  { %v4165_v58 = vmul.f32 %v4163_v55, %v4163_v55  ;;  %v4170_v21 = vsel %vm48_vm0, %v4166_v60, 0.0 }
 0xe5e   :  { %v4167_v59 = vsel %vm48_vm0, %v4165_v58, 0.0 }
 0xe5f   :  { %4168 = vadd.xlane.f32.xlu0 %v4167_v59 }
 0xe63   :  { %4171 = vadd.xlane.f32.xlu0 %v4170_v21 }
 0xee8   :  { %v4169_v0 = vpop.xlane.xlu0 %4168 }
 0xee9   :  { %v4173_v10 = vmul.f32 0.03125, %v4169_v0 }
 0xeeb   :  { %v4175_v1 = vadd.f32 1e-05, %v4173_v10 }
 0xeec   :  { %v4172_v2 = vpop.xlane.xlu0 %4171 }
 0xeed   :  { %5113 = vrsqrt.f32 %v4175_v1  ;;  %v4174_v3 = vmul.f32 0.03125, %v4172_v2  ;;  %v4420_v1 = vrot.slane %v4525_v62, %v5248_v18 }
 0xeef   :  { %v4176_v4 = vadd.f32 1e-05, %v4174_v3 }
 0xef1   :  { %5115 = vrsqrt.f32 %v4176_v4 }
 0xefa   :  { %v5114_v7 = vpop.eup %5113 }
 0xefb   :  { %v4179_v11 = vmul.f32 %v5114_v7, %v4163_v55 }
 0xefd   :  { %v4185_v14 = vmul.f32 %v4184_v6, %v4179_v11 }
 0xefe   :  { %v5116_v45 = vpop.eup %5115 }
 0xeff   :  { %v4180_v47 = vmul.f32 %v5116_v45, %v4164_v54  ;;  %v4191_v16 = vadd.f32 %v4190_v13, %v4185_v14 }
 0xf01   :  { %v4186_v22 = vmul.f32 %v4184_v6, %v4180_v47  ;;  %5014 = vmatprep.mubr.msk.f32.mxu0 %vm48_vm0, %v4191_v16 }
 0xf03   :  { %v4192_v23 = vadd.f32 %v4190_v13, %v4186_v22 }
 0xf05   :  { %5015 = vmatmul.mubr.msk.f32.vlgmr.msra.gmra.mxu0 %vm48_vm0, %v4192_v23 }
 0xfc5   :  { %v5016_v28 = vpop.f32.mrf.mxu0 }
 0xfc6   :  { %v4280_v29 = vadd.f32 %v5016_v28, %v4201_v57 }
 0xfc7   :  { %v4274_v31 = vpop.f32.mrf.mxu0 }
 0xfc8   :  { %v4286_v32 = vmul.f32 0.70710677, %v4280_v29  ;;  %v4275_v33 = vadd.f32 %v4274_v31, %v4201_v57  ;;  %v4284_v37 = vmul.f32 0.5, %v4280_v29 }
 0xfca   :  { %5117 = verf.f32 %v4286_v32  ;;  %v4285_v34 = vmul.f32 0.70710677, %v4275_v33  ;;  %v4283_v48 = vmul.f32 0.5, %v4275_v33 }
 0xfcc   :  { %5119 = verf.f32 %v4285_v34  ;;  %v4568_v34 = vld [vmem:[%s5692_s4] ss:$0 sm:$0xff] }
 0xfd7   :  { %v5118_v42 = vpop.eup %5117 }
 0xfd8   :  { %v4290_v35 = vadd.f32 1.0, %v5118_v42 }
 0xfd9   :  { %v5120_v50 = vpop.eup %5119 }
 0xfda   :  { %v4289_v36 = vadd.f32 1.0, %v5120_v50  ;;  %v4292_v39 = vmul.f32 %v4290_v35, %v4284_v37  ;;  %v4569_v35 = vld [vmem:[%s5692_s4 + $0x1] ss:$0 sm:$0xff] }
 0xfdc   :  { %v4291_v38 = vmul.f32 %v4289_v36, %v4283_v48 }
 0xfde   :  { %5025 = vmatprep.mubr.msk.f32.mxu1 %vm48_vm0, %v4291_v38 }
 0xfdf   :  { %5026 = vmatmul.mubr.msk.f32.vlgmr.msra.gmra.mxu1 %vm48_vm0, %v4292_v39 }
0x109f   :  { %v5027_v40 = vpop.f32.mrf.mxu1 }
0x10a0   :  { %v4380_v41 = vadd.f32 %v5027_v40, %v4301_v12 }
0x10a1   :  { %v4374_v43 = vpop.f32.mrf.mxu1 }
0x10a2   :  { %v4375_v9 = vadd.f32 %v4374_v43, %v4301_v12  ;;  %v4384_v44 = vadd.f32 %v4380_v41, %v4192_v23 }
0x10a4   :  { %v4388_v8 = vsel %vm48_vm0, %v4384_v44, 0.0  ;;  %v4383_v46 = vadd.f32 %v4375_v9, %v4191_v16 }
0x10a5   :  { %4389 = vadd.xlane.f32.xlu0 %v4388_v8 }
0x10a6   :  { %v4385_v19 = vsel %vm48_vm0, %v4383_v46, 0.0 }
0x10a7   :  { %4386 = vadd.xlane.f32.xlu1 %v4385_v19 }
0x112e   :  { %v4390_v49 = vpop.xlane.xlu0 %4389 }
0x112f   :  { %v4392_v5 = vmul.f32 0.03125, %v4390_v49 }
0x1130   :  { %v4387_v51 = vpop.xlane.xlu1 %4386 }
0x1131   :  { %v4394_v52 = vsub.f32 %v4384_v44, %v4392_v5  ;;  %v4391_v53 = vmul.f32 0.03125, %v4387_v51 }
0x1133   :  { %v4393_v15 = vsub.f32 %v4383_v46, %v4391_v53  ;;  %v4396_v54 = vmul.f32 %v4394_v52, %v4394_v52 }
0x1135   :  { %v4400_v30 = vsel %vm48_vm0, %v4396_v54, 0.0  ;;  %v4395_v25 = vmul.f32 %v4393_v15, %v4393_v15 }
0x1136   :  { %4401 = vadd.xlane.f32.xlu0 %v4400_v30 }
0x1137   :  { %v4397_v55 = vsel %vm48_vm0, %v4395_v25, 0.0 }
0x1138   :  { %4398 = vadd.xlane.f32.xlu1 %v4397_v55 }
0x11bf   :  { %v4402_v58 = vpop.xlane.xlu0 %4401 }
0x11c0   :  { %v4404_v59 = vmul.f32 0.03125, %v4402_v58 }
0x11c1   :  { %v4399_v60 = vpop.xlane.xlu1 %4398 }
0x11c2   :  { %v4406_v21 = vadd.f32 1e-05, %v4404_v59  ;;  %v4403_v61 = vmul.f32 0.03125, %v4399_v60 }
0x11c4   :  { %5121 = vrsqrt.f32 %v4406_v21  ;;  %v4405_v20 = vadd.f32 1e-05, %v4403_v61 }
0x11c6   :  { %5123 = vrsqrt.f32 %v4405_v20 }
0x11d1   :  { %v5122_v0 = vpop.eup %5121 }
0x11d2   :  { %v4410_v10 = vmul.f32 %v5122_v0, %v4394_v52 }
0x11d3   :  { %v5124_v2 = vpop.eup %5123 }
0x11d4   :  { %v4416_v3 = vmul.f32 %v4414_v63, %v4410_v10  ;;  %v4409_v4 = vmul.f32 %v5124_v2, %v4393_v15 }
0x11d6   :  { %v4422_v6 = vadd.f32 %v4420_v1, %v4416_v3  ;;  %v4415_v7 = vmul.f32 %v4414_v63, %v4409_v4 }
0x11d8   :  { %v4428_v11 = vsel %vm48_vm0, %v4422_v6, 0.0  ;;  %v4421_v13 = vadd.f32 %v4420_v1, %v4415_v7 }
0x11d9   :  { %4429 = vadd.xlane.f32.xlu0 %v4428_v11 }
0x11da   :  { %v4425_v14 = vsel %vm48_vm0, %v4421_v13, 0.0 }
0x11db   :  { %4426 = vadd.xlane.f32.xlu1 %v4425_v14 }
0x1262   :  { %v4430_v45 = vpop.xlane.xlu0 %4429 }
0x1263   :  { %v4432_v47 = vmul.f32 0.03125, %v4430_v45 }
0x1264   :  { %v4427_v16 = vpop.xlane.xlu1 %4426 }
0x1265   :  { %v4434_v17 = vsub.f32 %v4422_v6, %v4432_v47  ;;  %v4431_v22 = vmul.f32 0.03125, %v4427_v16 }
0x1267   :  { %v4433_v23 = vsub.f32 %v4421_v13, %v4431_v22  ;;  %v4436_v24 = vmul.f32 %v4434_v17, %v4434_v17 }
0x1269   :  { %v4440_v18 = vsel %vm48_vm0, %v4436_v24, 0.0  ;;  %v4435_v56 = vmul.f32 %v4433_v23, %v4433_v23 }
0x126a   :  { %4441 = vadd.xlane.f32.xlu0 %v4440_v18 }
0x126b   :  { %v4437_v26 = vsel %vm48_vm0, %v4435_v56, 0.0 }
0x126c   :  { %4438 = vadd.xlane.f32.xlu1 %v4437_v26 }
0x12f3   :  { %v4442_v27 = vpop.xlane.xlu0 %4441 }
0x12f4   :  { %v4444_v57 = vmul.f32 0.03125, %v4442_v27 }
0x12f5   :  { %v4439_v28 = vpop.xlane.xlu1 %4438 }
0x12f6   :  { %v4446_v29 = vadd.f32 1e-05, %v4444_v57  ;;  %v4443_v31 = vmul.f32 0.03125, %v4439_v28 }
0x12f8   :  { %5125 = vrsqrt.f32 %v4446_v29  ;;  %v4445_v32 = vadd.f32 1e-05, %v4443_v31 }
0x12fa   :  { %5127 = vrsqrt.f32 %v4445_v32 }
0x1305   :  { %v5126_v33 = vpop.eup %5125 }
0x1306   :  { %v4450_v42 = vmul.f32 %v5126_v33, %v4434_v17 }
0x1307   :  { %v5128_v50 = vpop.eup %5127 }
0x1308   :  { %v4449_v48 = vmul.f32 %v5128_v50, %v4433_v23  ;;  %v4456_v36 = vmul.f32 %v4568_v34, %v4450_v42 }
0x130a   :  { %v4455_v37 = vmul.f32 %v4568_v34, %v4449_v48  ;;  %v4462_v38 = vadd.f32 %v4569_v35, %v4456_v36 }
0x130c   :  { %v4461_v39 = vadd.f32 %v4569_v35, %v4455_v37  ;;  %4464 = vst.msk [vmem:[#allocation5 + $0x8] sm:$0xff] %vm48_vm0, %v4462_v38 }
0x130e   :  { %4463 = vst.msk [vmem:[#allocation5] sm:$0xff] %vm48_vm0, %v4461_v39 }
0x130f   :  { %5161 = shalt.err (!%p5158_p9)
}
0x1310   :  { %4476 = dma.vmem_to_hbm [thread:$0]  %s4471_s20, 256, %s5693_s5, [#allocation4], %s5175_s21, %s5175_s21, %s5176_s22  }
0x1311   :  { %5172 = dma.done.wait [#allocation4], 256  }
0x1312   :  { %5173 = vsyncadd [#allocation4], 4294967040 }
0x1313   :  { %4480 = vsyncpa [#allocation3], 1 }
0x1314   :  { %4481 = vsyncpa [#allocation4], 1 }

</bundles_post_ra>
